<compile_context>
chip_gen: v7x
topology: tpu7x:2x2x1
jax: 0.10.0
libtpu: 0.0.40
codegen_flags: <defaults>
</compile_context>

<pallas_src>
import jax
import jax.numpy as jnp
from jax import lax
from jax.experimental import pallas as pl
from jax.experimental.pallas import tpu as pltpu

# ---- small config consistent with the module's forward ----
B = 2          # batch
T = 8          # max original-word sequence length
T_SUB = 10     # subword sequence length fed to the embedder
VOCAB = 50
E = 32         # embedder output dim
HID = 32       # config.hidden_dim (bidirectional total)
H = HID // 2   # per-direction LSTM hidden size
L = 8          # label_size incl. PAD / START / STOP
PAD_IDX, START_IDX, STOP_IDX = 5, 6, 7


def _vmem():
    return pl.BlockSpec(memory_space=pltpu.MemorySpace.VMEM)


# ---------------------------------------------------------------------------
# Fused kernel: gate matmul + bidirectional LSTM + hidden2tag + linear-chain CRF
# ---------------------------------------------------------------------------

def build_fused_forward(T_, B_, E_, H_, L_):
    TWOH = 2 * H_        # combined state width (fwd | bwd)
    G = 8 * H_           # combined gate width = 128 lanes (lane-dense)

    def kernel(x_ref, wg_ref, bg_ref, wrec_ref, wtag_ref, btag_ref,
               trans_ref, tstart_ref, tend_ref, oh_ref, valid_ref, ohlast_ref,
               out_ref):
        # ---------------- input gate projection (one lane-dense matmul) -------------
        x = x_ref[...]                                    # (T*B, E), time-major rows
        gx = jnp.dot(x, wg_ref[...],
                     preferred_element_type=jnp.float32) + bg_ref[...]   # (T*B, 8H)

        # static lane masks (gate-major, direction-interleaved layout:
        # [i_f|i_b|f_f|f_b|g_f|g_b|o_f|o_b], each sub-block H lanes)
        lane = lax.broadcasted_iota(jnp.int32, (1, G), 1)
        dir_mask = (lane & (TWOH - 1)) < H_               # True -> forward-direction lane
        g_mask = (lane >= 4 * H_) & (lane < 6 * H_)       # cell-gate lanes -> tanh
        lane2 = lax.broadcasted_iota(jnp.int32, (1, TWOH), 1)
        fwd_half = lane2 < H_                             # first half of combined state

        valid = valid_ref[...]                            # (T*B, 1) float {0,1}

        # ---------------- merged fwd/bwd LSTM (fully unrolled) ----------------------
        h = jnp.zeros((B_, TWOH), jnp.float32)            # [h_f | h_b]
        c = jnp.zeros((B_, TWOH), jnp.float32)            # [c_f | c_b]
        h_f = [None] * T_
        h_b = [None] * T_
        wrec = wrec_ref[...]                              # (2H, 8H) block-diagonal

        for s in range(T_):
            tb = T_ - 1 - s
            # fwd gates come from time s, bwd gates from time tb (lane select, no shuffle)
            ga = jnp.where(dir_mask,
                           gx[s * B_:(s + 1) * B_, :],
                           gx[tb * B_:(tb + 1) * B_, :])                  # (B, 8H)
            gates = ga + jnp.dot(h, wrec, preferred_element_type=jnp.float32)
            act = jnp.where(g_mask, jnp.tanh(gates), jax.nn.sigmoid(gates))
            i_g = act[:, 0:TWOH]
            f_g = act[:, TWOH:2 * TWOH]
            g_g = act[:, 2 * TWOH:3 * TWOH]
            o_g = act[:, 3 * TWOH:4 * TWOH]
            c_new = f_g * c + i_g * g_g
            h_new = o_g * jnp.tanh(c_new)

            vf = valid[s * B_:(s + 1) * B_, :]            # (B, 1) validity at time s
            vb = valid[tb * B_:(tb + 1) * B_, :]          # (B, 1) validity at time tb
            vcat = jnp.where(fwd_half, vf, vb)            # (B, 2H)
            keep = vcat > 0.0
            h = jnp.where(keep, h_new, h)                 # hold carry at pad steps
            c = jnp.where(keep, c_new, c)

            # pad_packed semantics: padded outputs are zero
            h_f[s] = h_new[:, 0:H_] * vf
            h_b[tb] = h_new[:, H_:TWOH] * vb

        # ---------------- hidden2tag: one matmul on stored outputs ------------------
        feats = jnp.concatenate(
            [jnp.concatenate([h_f[t], h_b[t]], axis=1) for t in range(T_)], axis=0)
        emit_all = jnp.dot(feats, wtag_ref[...],
                           preferred_element_type=jnp.float32) + btag_ref[...]  # (T*B, L)

        # ---------------- linear-chain CRF ------------------------------------------
        trans = trans_ref[...]                            # (L, L): trans[i, j] = i -> j
        transb = jnp.broadcast_to(trans[None, :, :], (B_, L_, L_))   # hoisted once
        tstart = tstart_ref[...]                          # (1, L) = transition[START, :]
        tend = tend_ref[...]                              # (1, L) = transition[:, STOP]
        oh = oh_ref[...]                                  # (T*B, L) onehots, zeroed at pad

        emit0 = emit_all[0:B_, :]
        oh0 = oh[0:B_, :]
        alpha = tstart + emit0                                            # (B, L)
        gold = jnp.sum(oh0 * (emit0 + tstart), axis=1, keepdims=True)     # (B, 1)

        for t in range(1, T_):
            emit = emit_all[t * B_:(t + 1) * B_, :]
            oh_t = oh[t * B_:(t + 1) * B_, :]
            oh_p = oh[(t - 1) * B_:t * B_, :]
            v = valid[t * B_:(t + 1) * B_, :]
            # partition-function recursion: logsumexp over previous label
            m = alpha[:, :, None] + transb                                # (B, L, L)
            mmax = jnp.max(m, axis=1)                                     # (B, L)
            lse = jnp.log(jnp.sum(jnp.exp(m - mmax[:, None, :]), axis=1)) + mmax
            alpha = jnp.where(v > 0.0, lse + emit, alpha)
            # gold path: emission + transition (VPU only; pad onehots are all-zero)
            trans_sel = jnp.sum(oh_p[:, :, None] * transb, axis=1)        # (B, L)
            gold = gold + jnp.sum(oh_t * (emit + trans_sel), axis=1, keepdims=True)

        final = alpha + tend
        fmax = jnp.max(final, axis=1, keepdims=True)
        unlabeled = jnp.log(jnp.sum(jnp.exp(final - fmax), axis=1, keepdims=True)) + fmax
        labeled = gold + jnp.sum(ohlast_ref[...] * tend, axis=1, keepdims=True)
        out_ref[...] = jnp.sum(unlabeled - labeled, axis=0, keepdims=True)   # (1, 1)

    return pl.pallas_call(
        kernel,
        out_shape=jax.ShapeDtypeStruct((1, 1), jnp.float32),
        in_specs=[_vmem()] * 12,
        out_specs=_vmem(),
    )


FUSED_FORWARD = build_fused_forward(T, B, E, H, L)


# ---------------------------------------------------------------------------
# Parameters
# ---------------------------------------------------------------------------

def init_params(key):
    ks = jax.random.split(key, 10)

    def n(k, shape, scale=0.1):
        return (scale * jax.random.normal(k, shape)).astype(jnp.float32)

    transition = jax.random.normal(ks[9], (L, L)).astype(jnp.float32)
    transition = transition.at[:, START_IDX].set(-10000.0)
    transition = transition.at[STOP_IDX, :].set(-10000.0)
    transition = transition.at[:, PAD_IDX].set(-10000.0)
    transition = transition.at[PAD_IDX, :].set(-10000.0)

    return {
        "tok_emb": n(ks[0], (VOCAB, E), 1.0),
        "emb_proj_w": n(ks[1], (E, E)),
        "emb_proj_b": jnp.zeros((E,), jnp.float32),
        "wih_f": n(ks[2], (E, 4 * H)),
        "whh_f": n(ks[3], (H, 4 * H)),
        "bias_f": jnp.zeros((4 * H,), jnp.float32),
        "wih_b": n(ks[4], (E, 4 * H)),
        "whh_b": n(ks[5], (H, 4 * H)),
        "bias_b": jnp.zeros((4 * H,), jnp.float32),
        "w_tag": n(ks[6], (HID, L)),
        "b_tag": jnp.zeros((L,), jnp.float32),
        "transition": transition,
    }


def fold_params(params):
    """One-time weight folding (exact in eval mode):
       - emb_proj folded into the LSTM input projections,
       - both directions concatenated into one lane-dense (E, 8H=128) gate weight
         with gate-major / direction-interleaved columns [i_f|i_b|f_f|f_b|g_f|g_b|o_f|o_b],
       - recurrent weights packed block-diagonally into (2H, 8H)."""
    wihs_f = params["emb_proj_w"] @ params["wih_f"]                      # (E, 4H)
    wihs_b = params["emb_proj_w"] @ params["wih_b"]
    bf = params["emb_proj_b"] @ params["wih_f"] + params["bias_f"]       # (4H,)
    bb = params["emb_proj_b"] @ params["wih_b"] + params["bias_b"]

    def interleave(wf, wb):   # (R,4H),(R,4H) -> (R,8H)
        return jnp.concatenate(
            [jnp.concatenate([wf[:, k * H:(k + 1) * H], wb[:, k * H:(k + 1) * H]], axis=1)
             for k in range(4)], axis=1)

    wg = interleave(wihs_f, wihs_b)                                      # (E, 8H)
    bg = interleave(bf[None, :], bb[None, :])                            # (1, 8H)

    wrec = jnp.zeros((2 * H, 8 * H), jnp.float32)
    for k in range(4):
        wrec = wrec.at[0:H, 2 * k * H:(2 * k + 1) * H].set(
            params["whh_f"][:, k * H:(k + 1) * H])
        wrec = wrec.at[H:2 * H, (2 * k + 1) * H:(2 * k + 2) * H].set(
            params["whh_b"][:, k * H:(k + 1) * H])

    trans = params["transition"]
    return {
        "tok_emb": params["tok_emb"],
        "wg": wg.astype(jnp.float32),
        "bg": bg.astype(jnp.float32),
        "wrec": wrec,
        "w_tag": params["w_tag"],
        "b_tag": params["b_tag"].reshape(1, L),
        "trans": trans,
        "tstart": trans[START_IDX][None, :],
        "tend": trans[:, STOP_IDX][None, :],
    }


# ---------------------------------------------------------------------------
# Forward pass (wrapper only does embedding gather + label/mask prep)
# ---------------------------------------------------------------------------

@jax.jit
def transformers_crf_forward(fparams, words, word_seq_lens, orig_to_tok_index,
                             input_mask, labels):
    Bsz, Tlen = orig_to_tok_index.shape

    # --- TransformersEmbedder ---
    # TODO(synk): pretrained transformer replaced by deterministic embedding lookup;
    # subword->word pooling kept via orig_to_tok_index gather, and its dense projection
    # is folded into the LSTM gate weights (fold_params).
    sub_emb = fparams["tok_emb"][words] * input_mask[..., None].astype(jnp.float32)
    word_rep = jnp.take_along_axis(sub_emb, orig_to_tok_index[..., None], axis=1)  # (B,T,E)
    x_tm = word_rep.transpose(1, 0, 2).reshape(Tlen * Bsz, E)          # time-major (T*B, E)

    # --- label / length prep (lane-arranged; replaces in-kernel integer handling) ---
    lens = word_seq_lens.astype(jnp.int32)
    valid = (jnp.arange(Tlen, dtype=jnp.int32)[:, None] < lens[None, :]).astype(jnp.float32)  # (T,B)
    oh = jax.nn.one_hot(labels, L, dtype=jnp.float32) * valid.T[..., None]                    # (B,T,L)
    oh_tm = oh.transpose(1, 0, 2).reshape(Tlen * Bsz, L)
    valid_tm = valid.reshape(Tlen * Bsz, 1)
    last_lab = jnp.take_along_axis(labels, (lens - 1)[:, None], axis=1)[:, 0]
    oh_last = jax.nn.one_hot(last_lab, L, dtype=jnp.float32)           # (B, L)

    # --- single fused kernel: gates + BiLSTM + hidden2tag + CRF ---
    nll = FUSED_FORWARD(x_tm, fparams["wg"], fparams["bg"], fparams["wrec"],
                        fparams["w_tag"], fparams["b_tag"], fparams["trans"],
                        fparams["tstart"], fparams["tend"],
                        oh_tm, valid_tm, oh_last)
    return nll[0, 0]


if __name__ == "__main__":
    key = jax.random.PRNGKey(0)
    kp, kd = jax.random.split(key)
    params = init_params(kp)
    fparams = fold_params(params)      # one-time weight folding

    k1, k2 = jax.random.split(kd)
    words = jax.random.randint(k1, (B, T_SUB), 0, VOCAB, dtype=jnp.int32)
    orig_to_tok_index = jnp.broadcast_to(
        jnp.minimum(jnp.arange(T, dtype=jnp.int32) + 1, T_SUB - 1), (B, T))
    input_mask = jnp.ones((B, T_SUB), jnp.int32)
    word_seq_lens = jnp.array([T, 5], jnp.int32)
    labels = jax.random.randint(k2, (B, T), 0, 5, dtype=jnp.int32)  # real labels only

    nll = transformers_crf_forward(fparams, words, word_seq_lens,
                                   orig_to_tok_index, input_mask, labels)
    nll = jax.block_until_ready(nll)
    assert jnp.isfinite(nll)
    print("KERNEL_OK")
</pallas_src>

<mosaic_0001>
module attributes {stable_mosaic.version = 11 : i64} {
  func.func @kernel(%arg0: memref<16x32xf32, #tpu.memory_space<vmem>>, %arg1: memref<32x128xf32, #tpu.memory_space<vmem>>, %arg2: memref<1x128xf32, #tpu.memory_space<vmem>>, %arg3: memref<32x128xf32, #tpu.memory_space<vmem>>, %arg4: memref<32x8xf32, #tpu.memory_space<vmem>>, %arg5: memref<1x8xf32, #tpu.memory_space<vmem>>, %arg6: memref<8x8xf32, #tpu.memory_space<vmem>>, %arg7: memref<1x8xf32, #tpu.memory_space<vmem>>, %arg8: memref<1x8xf32, #tpu.memory_space<vmem>>, %arg9: memref<16x8xf32, #tpu.memory_space<vmem>>, %arg10: memref<16x1xf32, #tpu.memory_space<vmem>>, %arg11: memref<2x8xf32, #tpu.memory_space<vmem>>, %arg12: memref<1x1xf32, #tpu.memory_space<vmem>>) attributes {dimension_semantics = [], scalar_prefetch = 0 : i64, scratch_operands = 0 : i64, tpu.core_type = #tpu.core_type<tc>} {
    %c0 = arith.constant 0 : index
    %c0_0 = arith.constant 0 : index
    %0 = vector.load %arg0[%c0, %c0_0] : memref<16x32xf32, #tpu.memory_space<vmem>>, vector<16x32xf32>
    %c0_1 = arith.constant 0 : index
    %c0_2 = arith.constant 0 : index
    %1 = vector.load %arg1[%c0_1, %c0_2] : memref<32x128xf32, #tpu.memory_space<vmem>>, vector<32x128xf32>
    %cst = arith.constant dense<0.000000e+00> : vector<16x128xf32>
    %2 = tpu.matmul %0, %1, %cst {dimension_numbers = #tpu.dot_dimension_numbers<[1], [0], [0], [1], [0, 0, 1, 1], [], []>} : vector<16x32xf32>, vector<32x128xf32>, vector<16x128xf32> -> vector<16x128xf32>
    %c0_3 = arith.constant 0 : index
    %c0_4 = arith.constant 0 : index
    %3 = vector.load %arg2[%c0_3, %c0_4] : memref<1x128xf32, #tpu.memory_space<vmem>>, vector<1x128xf32>
    %4 = vector.broadcast %3 : vector<1x128xf32> to vector<16x128xf32>
    %5 = arith.addf %2, %4 : vector<16x128xf32>
    %6 = tpu.iota {dimensions = array<i32: 1>} : vector<1x128xi32>
    %c31_i32 = arith.constant 31 : i32
    %7 = vector.broadcast %c31_i32 : i32 to vector<1x128xi32>
    %8 = arith.andi %6, %7 : vector<1x128xi32>
    %c16_i32 = arith.constant 16 : i32
    %9 = vector.broadcast %c16_i32 : i32 to vector<1x128xi32>
    %10 = arith.cmpi slt, %8, %9 : vector<1x128xi32>
    %c64_i32 = arith.constant 64 : i32
    %11 = vector.broadcast %c64_i32 : i32 to vector<1x128xi32>
    %12 = arith.cmpi sge, %6, %11 : vector<1x128xi32>
    %c96_i32 = arith.constant 96 : i32
    %13 = vector.broadcast %c96_i32 : i32 to vector<1x128xi32>
    %14 = arith.cmpi slt, %6, %13 : vector<1x128xi32>
    %15 = arith.andi %12, %14 : vector<1x128xi1>
    %16 = tpu.iota {dimensions = array<i32: 1>} : vector<1x32xi32>
    %c16_i32_5 = arith.constant 16 : i32
    %17 = vector.broadcast %c16_i32_5 : i32 to vector<1x32xi32>
    %18 = arith.cmpi slt, %16, %17 : vector<1x32xi32>
    %c0_6 = arith.constant 0 : index
    %c0_7 = arith.constant 0 : index
    %19 = vector.load %arg10[%c0_6, %c0_7] : memref<16x1xf32, #tpu.memory_space<vmem>>, vector<16x1xf32>
    %cst_8 = arith.constant 0.000000e+00 : f32
    %20 = vector.broadcast %cst_8 : f32 to vector<2x32xf32>
    %cst_9 = arith.constant 0.000000e+00 : f32
    %21 = vector.broadcast %cst_9 : f32 to vector<2x32xf32>
    %c0_10 = arith.constant 0 : index
    %c0_11 = arith.constant 0 : index
    %22 = vector.load %arg3[%c0_10, %c0_11] : memref<32x128xf32, #tpu.memory_space<vmem>>, vector<32x128xf32>
    %23 = vector.extract_strided_slice %5 {offsets = [0, 0], sizes = [2, 128], strides = [1, 1]} : vector<16x128xf32> to vector<2x128xf32>
    %24 = vector.extract_strided_slice %5 {offsets = [14, 0], sizes = [2, 128], strides = [1, 1]} : vector<16x128xf32> to vector<2x128xf32>
    %25 = vector.shape_cast %10 : vector<1x128xi1> to vector<1x128xi1>
    %26 = vector.broadcast %25 : vector<1x128xi1> to vector<2x128xi1>
    %27 = arith.select %26, %23, %24 : vector<2x128xi1>, vector<2x128xf32>
    %cst_12 = arith.constant dense<0.000000e+00> : vector<2x128xf32>
    %28 = tpu.matmul %20, %22, %cst_12 {dimension_numbers = #tpu.dot_dimension_numbers<[1], [0], [0], [1], [0, 0, 1, 1], [], []>} : vector<2x32xf32>, vector<32x128xf32>, vector<2x128xf32> -> vector<2x128xf32>
    %29 = arith.addf %27, %28 : vector<2x128xf32>
    %30 = math.tanh %29 : vector<2x128xf32>
    %31 = arith.negf %29 : vector<2x128xf32>
    %32 = math.exp %31 : vector<2x128xf32>
    %cst_13 = arith.constant 1.000000e+00 : f32
    %33 = vector.broadcast %cst_13 : f32 to vector<2x128xf32>
    %34 = arith.addf %33, %32 : vector<2x128xf32>
    %35 = arith.divf %33, %34 : vector<2x128xf32>
    %36 = vector.shape_cast %15 : vector<1x128xi1> to vector<1x128xi1>
    %37 = vector.broadcast %36 : vector<1x128xi1> to vector<2x128xi1>
    %38 = arith.select %37, %30, %35 : vector<2x128xi1>, vector<2x128xf32>
    %39 = vector.extract_strided_slice %38 {offsets = [0, 0], sizes = [2, 32], strides = [1, 1]} : vector<2x128xf32> to vector<2x32xf32>
    %40 = vector.extract_strided_slice %38 {offsets = [0, 32], sizes = [2, 32], strides = [1, 1]} : vector<2x128xf32> to vector<2x32xf32>
    %41 = vector.extract_strided_slice %38 {offsets = [0, 64], sizes = [2, 32], strides = [1, 1]} : vector<2x128xf32> to vector<2x32xf32>
    %42 = vector.extract_strided_slice %38 {offsets = [0, 96], sizes = [2, 32], strides = [1, 1]} : vector<2x128xf32> to vector<2x32xf32>
    %43 = arith.mulf %40, %21 : vector<2x32xf32>
    %44 = arith.mulf %39, %41 : vector<2x32xf32>
    %45 = arith.addf %43, %44 : vector<2x32xf32>
    %46 = math.tanh %45 : vector<2x32xf32>
    %47 = arith.mulf %42, %46 : vector<2x32xf32>
    %48 = vector.extract_strided_slice %19 {offsets = [0, 0], sizes = [2, 1], strides = [1, 1]} : vector<16x1xf32> to vector<2x1xf32>
    %49 = vector.extract_strided_slice %19 {offsets = [14, 0], sizes = [2, 1], strides = [1, 1]} : vector<16x1xf32> to vector<2x1xf32>
    %50 = vector.shape_cast %18 : vector<1x32xi1> to vector<1x32xi1>
    %51 = vector.broadcast %50 : vector<1x32xi1> to vector<2x32xi1>
    %52 = vector.shape_cast %48 : vector<2x1xf32> to vector<2x1xf32>
    %53 = vector.broadcast %52 : vector<2x1xf32> to vector<2x32xf32>
    %54 = vector.shape_cast %49 : vector<2x1xf32> to vector<2x1xf32>
    %55 = vector.broadcast %54 : vector<2x1xf32> to vector<2x32xf32>
    %56 = arith.select %51, %53, %55 : vector<2x32xi1>, vector<2x32xf32>
    %cst_14 = arith.constant 0.000000e+00 : f32
    %57 = vector.broadcast %cst_14 : f32 to vector<2x32xf32>
    %58 = arith.cmpf ogt, %56, %57 : vector<2x32xf32>
    %59 = arith.select %58, %47, %20 : vector<2x32xi1>, vector<2x32xf32>
    %60 = arith.select %58, %45, %21 : vector<2x32xi1>, vector<2x32xf32>
    %61 = vector.extract_strided_slice %47 {offsets = [0, 0], sizes = [2, 16], strides = [1, 1]} : vector<2x32xf32> to vector<2x16xf32>
    %62 = vector.broadcast %48 : vector<2x1xf32> to vector<2x16xf32>
    %63 = arith.mulf %61, %62 : vector<2x16xf32>
    %64 = vector.extract_strided_slice %47 {offsets = [0, 16], sizes = [2, 16], strides = [1, 1]} : vector<2x32xf32> to vector<2x16xf32>
    %65 = vector.broadcast %49 : vector<2x1xf32> to vector<2x16xf32>
    %66 = arith.mulf %64, %65 : vector<2x16xf32>
    %67 = vector.extract_strided_slice %5 {offsets = [2, 0], sizes = [2, 128], strides = [1, 1]} : vector<16x128xf32> to vector<2x128xf32>
    %68 = vector.extract_strided_slice %5 {offsets = [12, 0], sizes = [2, 128], strides = [1, 1]} : vector<16x128xf32> to vector<2x128xf32>
    %69 = vector.shape_cast %10 : vector<1x128xi1> to vector<1x128xi1>
    %70 = vector.broadcast %69 : vector<1x128xi1> to vector<2x128xi1>
    %71 = arith.select %70, %67, %68 : vector<2x128xi1>, vector<2x128xf32>
    %cst_15 = arith.constant dense<0.000000e+00> : vector<2x128xf32>
    %72 = tpu.matmul %59, %22, %cst_15 {dimension_numbers = #tpu.dot_dimension_numbers<[1], [0], [0], [1], [0, 0, 1, 1], [], []>} : vector<2x32xf32>, vector<32x128xf32>, vector<2x128xf32> -> vector<2x128xf32>
    %73 = arith.addf %71, %72 : vector<2x128xf32>
    %74 = math.tanh %73 : vector<2x128xf32>
    %75 = arith.negf %73 : vector<2x128xf32>
    %76 = math.exp %75 : vector<2x128xf32>
    %cst_16 = arith.constant 1.000000e+00 : f32
    %77 = vector.broadcast %cst_16 : f32 to vector<2x128xf32>
    %78 = arith.addf %77, %76 : vector<2x128xf32>
    %79 = arith.divf %77, %78 : vector<2x128xf32>
    %80 = vector.shape_cast %15 : vector<1x128xi1> to vector<1x128xi1>
    %81 = vector.broadcast %80 : vector<1x128xi1> to vector<2x128xi1>
    %82 = arith.select %81, %74, %79 : vector<2x128xi1>, vector<2x128xf32>
    %83 = vector.extract_strided_slice %82 {offsets = [0, 0], sizes = [2, 32], strides = [1, 1]} : vector<2x128xf32> to vector<2x32xf32>
    %84 = vector.extract_strided_slice %82 {offsets = [0, 32], sizes = [2, 32], strides = [1, 1]} : vector<2x128xf32> to vector<2x32xf32>
    %85 = vector.extract_strided_slice %82 {offsets = [0, 64], sizes = [2, 32], strides = [1, 1]} : vector<2x128xf32> to vector<2x32xf32>
    %86 = vector.extract_strided_slice %82 {offsets = [0, 96], sizes = [2, 32], strides = [1, 1]} : vector<2x128xf32> to vector<2x32xf32>
    %87 = arith.mulf %84, %60 : vector<2x32xf32>
    %88 = arith.mulf %83, %85 : vector<2x32xf32>
    %89 = arith.addf %87, %88 : vector<2x32xf32>
    %90 = math.tanh %89 : vector<2x32xf32>
    %91 = arith.mulf %86, %90 : vector<2x32xf32>
    %92 = vector.extract_strided_slice %19 {offsets = [2, 0], sizes = [2, 1], strides = [1, 1]} : vector<16x1xf32> to vector<2x1xf32>
    %93 = vector.extract_strided_slice %19 {offsets = [12, 0], sizes = [2, 1], strides = [1, 1]} : vector<16x1xf32> to vector<2x1xf32>
    %94 = vector.shape_cast %18 : vector<1x32xi1> to vector<1x32xi1>
    %95 = vector.broadcast %94 : vector<1x32xi1> to vector<2x32xi1>
    %96 = vector.shape_cast %92 : vector<2x1xf32> to vector<2x1xf32>
    %97 = vector.broadcast %96 : vector<2x1xf32> to vector<2x32xf32>
    %98 = vector.shape_cast %93 : vector<2x1xf32> to vector<2x1xf32>
    %99 = vector.broadcast %98 : vector<2x1xf32> to vector<2x32xf32>
    %100 = arith.select %95, %97, %99 : vector<2x32xi1>, vector<2x32xf32>
    %cst_17 = arith.constant 0.000000e+00 : f32
    %101 = vector.broadcast %cst_17 : f32 to vector<2x32xf32>
    %102 = arith.cmpf ogt, %100, %101 : vector<2x32xf32>
    %103 = arith.select %102, %91, %59 : vector<2x32xi1>, vector<2x32xf32>
    %104 = arith.select %102, %89, %60 : vector<2x32xi1>, vector<2x32xf32>
    %105 = vector.extract_strided_slice %91 {offsets = [0, 0], sizes = [2, 16], strides = [1, 1]} : vector<2x32xf32> to vector<2x16xf32>
    %106 = vector.broadcast %92 : vector<2x1xf32> to vector<2x16xf32>
    %107 = arith.mulf %105, %106 : vector<2x16xf32>
    %108 = vector.extract_strided_slice %91 {offsets = [0, 16], sizes = [2, 16], strides = [1, 1]} : vector<2x32xf32> to vector<2x16xf32>
    %109 = vector.broadcast %93 : vector<2x1xf32> to vector<2x16xf32>
    %110 = arith.mulf %108, %109 : vector<2x16xf32>
    %111 = vector.extract_strided_slice %5 {offsets = [4, 0], sizes = [2, 128], strides = [1, 1]} : vector<16x128xf32> to vector<2x128xf32>
    %112 = vector.extract_strided_slice %5 {offsets = [10, 0], sizes = [2, 128], strides = [1, 1]} : vector<16x128xf32> to vector<2x128xf32>
    %113 = vector.shape_cast %10 : vector<1x128xi1> to vector<1x128xi1>
    %114 = vector.broadcast %113 : vector<1x128xi1> to vector<2x128xi1>
    %115 = arith.select %114, %111, %112 : vector<2x128xi1>, vector<2x128xf32>
    %cst_18 = arith.constant dense<0.000000e+00> : vector<2x128xf32>
    %116 = tpu.matmul %103, %22, %cst_18 {dimension_numbers = #tpu.dot_dimension_numbers<[1], [0], [0], [1], [0, 0, 1, 1], [], []>} : vector<2x32xf32>, vector<32x128xf32>, vector<2x128xf32> -> vector<2x128xf32>
    %117 = arith.addf %115, %116 : vector<2x128xf32>
    %118 = math.tanh %117 : vector<2x128xf32>
    %119 = arith.negf %117 : vector<2x128xf32>
    %120 = math.exp %119 : vector<2x128xf32>
    %cst_19 = arith.constant 1.000000e+00 : f32
    %121 = vector.broadcast %cst_19 : f32 to vector<2x128xf32>
    %122 = arith.addf %121, %120 : vector<2x128xf32>
    %123 = arith.divf %121, %122 : vector<2x128xf32>
    %124 = vector.shape_cast %15 : vector<1x128xi1> to vector<1x128xi1>
    %125 = vector.broadcast %124 : vector<1x128xi1> to vector<2x128xi1>
    %126 = arith.select %125, %118, %123 : vector<2x128xi1>, vector<2x128xf32>
    %127 = vector.extract_strided_slice %126 {offsets = [0, 0], sizes = [2, 32], strides = [1, 1]} : vector<2x128xf32> to vector<2x32xf32>
    %128 = vector.extract_strided_slice %126 {offsets = [0, 32], sizes = [2, 32], strides = [1, 1]} : vector<2x128xf32> to vector<2x32xf32>
    %129 = vector.extract_strided_slice %126 {offsets = [0, 64], sizes = [2, 32], strides = [1, 1]} : vector<2x128xf32> to vector<2x32xf32>
    %130 = vector.extract_strided_slice %126 {offsets = [0, 96], sizes = [2, 32], strides = [1, 1]} : vector<2x128xf32> to vector<2x32xf32>
    %131 = arith.mulf %128, %104 : vector<2x32xf32>
    %132 = arith.mulf %127, %129 : vector<2x32xf32>
    %133 = arith.addf %131, %132 : vector<2x32xf32>
    %134 = math.tanh %133 : vector<2x32xf32>
    %135 = arith.mulf %130, %134 : vector<2x32xf32>
    %136 = vector.extract_strided_slice %19 {offsets = [4, 0], sizes = [2, 1], strides = [1, 1]} : vector<16x1xf32> to vector<2x1xf32>
    %137 = vector.extract_strided_slice %19 {offsets = [10, 0], sizes = [2, 1], strides = [1, 1]} : vector<16x1xf32> to vector<2x1xf32>
    %138 = vector.shape_cast %18 : vector<1x32xi1> to vector<1x32xi1>
    %139 = vector.broadcast %138 : vector<1x32xi1> to vector<2x32xi1>
    %140 = vector.shape_cast %136 : vector<2x1xf32> to vector<2x1xf32>
    %141 = vector.broadcast %140 : vector<2x1xf32> to vector<2x32xf32>
    %142 = vector.shape_cast %137 : vector<2x1xf32> to vector<2x1xf32>
    %143 = vector.broadcast %142 : vector<2x1xf32> to vector<2x32xf32>
    %144 = arith.select %139, %141, %143 : vector<2x32xi1>, vector<2x32xf32>
    %cst_20 = arith.constant 0.000000e+00 : f32
    %145 = vector.broadcast %cst_20 : f32 to vector<2x32xf32>
    %146 = arith.cmpf ogt, %144, %145 : vector<2x32xf32>
    %147 = arith.select %146, %135, %103 : vector<2x32xi1>, vector<2x32xf32>
    %148 = arith.select %146, %133, %104 : vector<2x32xi1>, vector<2x32xf32>
    %149 = vector.extract_strided_slice %135 {offsets = [0, 0], sizes = [2, 16], strides = [1, 1]} : vector<2x32xf32> to vector<2x16xf32>
    %150 = vector.broadcast %136 : vector<2x1xf32> to vector<2x16xf32>
    %151 = arith.mulf %149, %150 : vector<2x16xf32>
    %152 = vector.extract_strided_slice %135 {offsets = [0, 16], sizes = [2, 16], strides = [1, 1]} : vector<2x32xf32> to vector<2x16xf32>
    %153 = vector.broadcast %137 : vector<2x1xf32> to vector<2x16xf32>
    %154 = arith.mulf %152, %153 : vector<2x16xf32>
    %155 = vector.extract_strided_slice %5 {offsets = [6, 0], sizes = [2, 128], strides = [1, 1]} : vector<16x128xf32> to vector<2x128xf32>
    %156 = vector.extract_strided_slice %5 {offsets = [8, 0], sizes = [2, 128], strides = [1, 1]} : vector<16x128xf32> to vector<2x128xf32>
    %157 = vector.shape_cast %10 : vector<1x128xi1> to vector<1x128xi1>
    %158 = vector.broadcast %157 : vector<1x128xi1> to vector<2x128xi1>
    %159 = arith.select %158, %155, %156 : vector<2x128xi1>, vector<2x128xf32>
    %cst_21 = arith.constant dense<0.000000e+00> : vector<2x128xf32>
    %160 = tpu.matmul %147, %22, %cst_21 {dimension_numbers = #tpu.dot_dimension_numbers<[1], [0], [0], [1], [0, 0, 1, 1], [], []>} : vector<2x32xf32>, vector<32x128xf32>, vector<2x128xf32> -> vector<2x128xf32>
    %161 = arith.addf %159, %160 : vector<2x128xf32>
    %162 = math.tanh %161 : vector<2x128xf32>
    %163 = arith.negf %161 : vector<2x128xf32>
    %164 = math.exp %163 : vector<2x128xf32>
    %cst_22 = arith.constant 1.000000e+00 : f32
    %165 = vector.broadcast %cst_22 : f32 to vector<2x128xf32>
    %166 = arith.addf %165, %164 : vector<2x128xf32>
    %167 = arith.divf %165, %166 : vector<2x128xf32>
    %168 = vector.shape_cast %15 : vector<1x128xi1> to vector<1x128xi1>
    %169 = vector.broadcast %168 : vector<1x128xi1> to vector<2x128xi1>
    %170 = arith.select %169, %162, %167 : vector<2x128xi1>, vector<2x128xf32>
    %171 = vector.extract_strided_slice %170 {offsets = [0, 0], sizes = [2, 32], strides = [1, 1]} : vector<2x128xf32> to vector<2x32xf32>
    %172 = vector.extract_strided_slice %170 {offsets = [0, 32], sizes = [2, 32], strides = [1, 1]} : vector<2x128xf32> to vector<2x32xf32>
    %173 = vector.extract_strided_slice %170 {offsets = [0, 64], sizes = [2, 32], strides = [1, 1]} : vector<2x128xf32> to vector<2x32xf32>
    %174 = vector.extract_strided_slice %170 {offsets = [0, 96], sizes = [2, 32], strides = [1, 1]} : vector<2x128xf32> to vector<2x32xf32>
    %175 = arith.mulf %172, %148 : vector<2x32xf32>
    %176 = arith.mulf %171, %173 : vector<2x32xf32>
    %177 = arith.addf %175, %176 : vector<2x32xf32>
    %178 = math.tanh %177 : vector<2x32xf32>
    %179 = arith.mulf %174, %178 : vector<2x32xf32>
    %180 = vector.extract_strided_slice %19 {offsets = [6, 0], sizes = [2, 1], strides = [1, 1]} : vector<16x1xf32> to vector<2x1xf32>
    %181 = vector.extract_strided_slice %19 {offsets = [8, 0], sizes = [2, 1], strides = [1, 1]} : vector<16x1xf32> to vector<2x1xf32>
    %182 = vector.shape_cast %18 : vector<1x32xi1> to vector<1x32xi1>
    %183 = vector.broadcast %182 : vector<1x32xi1> to vector<2x32xi1>
    %184 = vector.shape_cast %180 : vector<2x1xf32> to vector<2x1xf32>
    %185 = vector.broadcast %184 : vector<2x1xf32> to vector<2x32xf32>
    %186 = vector.shape_cast %181 : vector<2x1xf32> to vector<2x1xf32>
    %187 = vector.broadcast %186 : vector<2x1xf32> to vector<2x32xf32>
    %188 = arith.select %183, %185, %187 : vector<2x32xi1>, vector<2x32xf32>
    %cst_23 = arith.constant 0.000000e+00 : f32
    %189 = vector.broadcast %cst_23 : f32 to vector<2x32xf32>
    %190 = arith.cmpf ogt, %188, %189 : vector<2x32xf32>
    %191 = arith.select %190, %179, %147 : vector<2x32xi1>, vector<2x32xf32>
    %192 = arith.select %190, %177, %148 : vector<2x32xi1>, vector<2x32xf32>
    %193 = vector.extract_strided_slice %179 {offsets = [0, 0], sizes = [2, 16], strides = [1, 1]} : vector<2x32xf32> to vector<2x16xf32>
    %194 = vector.broadcast %180 : vector<2x1xf32> to vector<2x16xf32>
    %195 = arith.mulf %193, %194 : vector<2x16xf32>
    %196 = vector.extract_strided_slice %179 {offsets = [0, 16], sizes = [2, 16], strides = [1, 1]} : vector<2x32xf32> to vector<2x16xf32>
    %197 = vector.broadcast %181 : vector<2x1xf32> to vector<2x16xf32>
    %198 = arith.mulf %196, %197 : vector<2x16xf32>
    %199 = vector.extract_strided_slice %5 {offsets = [8, 0], sizes = [2, 128], strides = [1, 1]} : vector<16x128xf32> to vector<2x128xf32>
    %200 = vector.extract_strided_slice %5 {offsets = [6, 0], sizes = [2, 128], strides = [1, 1]} : vector<16x128xf32> to vector<2x128xf32>
    %201 = vector.shape_cast %10 : vector<1x128xi1> to vector<1x128xi1>
    %202 = vector.broadcast %201 : vector<1x128xi1> to vector<2x128xi1>
    %203 = arith.select %202, %199, %200 : vector<2x128xi1>, vector<2x128xf32>
    %cst_24 = arith.constant dense<0.000000e+00> : vector<2x128xf32>
    %204 = tpu.matmul %191, %22, %cst_24 {dimension_numbers = #tpu.dot_dimension_numbers<[1], [0], [0], [1], [0, 0, 1, 1], [], []>} : vector<2x32xf32>, vector<32x128xf32>, vector<2x128xf32> -> vector<2x128xf32>
    %205 = arith.addf %203, %204 : vector<2x128xf32>
    %206 = math.tanh %205 : vector<2x128xf32>
    %207 = arith.negf %205 : vector<2x128xf32>
    %208 = math.exp %207 : vector<2x128xf32>
    %cst_25 = arith.constant 1.000000e+00 : f32
    %209 = vector.broadcast %cst_25 : f32 to vector<2x128xf32>
    %210 = arith.addf %209, %208 : vector<2x128xf32>
    %211 = arith.divf %209, %210 : vector<2x128xf32>
    %212 = vector.shape_cast %15 : vector<1x128xi1> to vector<1x128xi1>
    %213 = vector.broadcast %212 : vector<1x128xi1> to vector<2x128xi1>
    %214 = arith.select %213, %206, %211 : vector<2x128xi1>, vector<2x128xf32>
    %215 = vector.extract_strided_slice %214 {offsets = [0, 0], sizes = [2, 32], strides = [1, 1]} : vector<2x128xf32> to vector<2x32xf32>
    %216 = vector.extract_strided_slice %214 {offsets = [0, 32], sizes = [2, 32], strides = [1, 1]} : vector<2x128xf32> to vector<2x32xf32>
    %217 = vector.extract_strided_slice %214 {offsets = [0, 64], sizes = [2, 32], strides = [1, 1]} : vector<2x128xf32> to vector<2x32xf32>
    %218 = vector.extract_strided_slice %214 {offsets = [0, 96], sizes = [2, 32], strides = [1, 1]} : vector<2x128xf32> to vector<2x32xf32>
    %219 = arith.mulf %216, %192 : vector<2x32xf32>
    %220 = arith.mulf %215, %217 : vector<2x32xf32>
    %221 = arith.addf %219, %220 : vector<2x32xf32>
    %222 = math.tanh %221 : vector<2x32xf32>
    %223 = arith.mulf %218, %222 : vector<2x32xf32>
    %224 = vector.extract_strided_slice %19 {offsets = [8, 0], sizes = [2, 1], strides = [1, 1]} : vector<16x1xf32> to vector<2x1xf32>
    %225 = vector.extract_strided_slice %19 {offsets = [6, 0], sizes = [2, 1], strides = [1, 1]} : vector<16x1xf32> to vector<2x1xf32>
    %226 = vector.shape_cast %18 : vector<1x32xi1> to vector<1x32xi1>
    %227 = vector.broadcast %226 : vector<1x32xi1> to vector<2x32xi1>
    %228 = vector.shape_cast %224 : vector<2x1xf32> to vector<2x1xf32>
    %229 = vector.broadcast %228 : vector<2x1xf32> to vector<2x32xf32>
    %230 = vector.shape_cast %225 : vector<2x1xf32> to vector<2x1xf32>
    %231 = vector.broadcast %230 : vector<2x1xf32> to vector<2x32xf32>
    %232 = arith.select %227, %229, %231 : vector<2x32xi1>, vector<2x32xf32>
    %cst_26 = arith.constant 0.000000e+00 : f32
    %233 = vector.broadcast %cst_26 : f32 to vector<2x32xf32>
    %234 = arith.cmpf ogt, %232, %233 : vector<2x32xf32>
    %235 = arith.select %234, %223, %191 : vector<2x32xi1>, vector<2x32xf32>
    %236 = arith.select %234, %221, %192 : vector<2x32xi1>, vector<2x32xf32>
    %237 = vector.extract_strided_slice %223 {offsets = [0, 0], sizes = [2, 16], strides = [1, 1]} : vector<2x32xf32> to vector<2x16xf32>
    %238 = vector.broadcast %224 : vector<2x1xf32> to vector<2x16xf32>
    %239 = arith.mulf %237, %238 : vector<2x16xf32>
    %240 = vector.extract_strided_slice %223 {offsets = [0, 16], sizes = [2, 16], strides = [1, 1]} : vector<2x32xf32> to vector<2x16xf32>
    %241 = vector.broadcast %225 : vector<2x1xf32> to vector<2x16xf32>
    %242 = arith.mulf %240, %241 : vector<2x16xf32>
    %243 = vector.extract_strided_slice %5 {offsets = [10, 0], sizes = [2, 128], strides = [1, 1]} : vector<16x128xf32> to vector<2x128xf32>
    %244 = vector.extract_strided_slice %5 {offsets = [4, 0], sizes = [2, 128], strides = [1, 1]} : vector<16x128xf32> to vector<2x128xf32>
    %245 = vector.shape_cast %10 : vector<1x128xi1> to vector<1x128xi1>
    %246 = vector.broadcast %245 : vector<1x128xi1> to vector<2x128xi1>
    %247 = arith.select %246, %243, %244 : vector<2x128xi1>, vector<2x128xf32>
    %cst_27 = arith.constant dense<0.000000e+00> : vector<2x128xf32>
    %248 = tpu.matmul %235, %22, %cst_27 {dimension_numbers = #tpu.dot_dimension_numbers<[1], [0], [0], [1], [0, 0, 1, 1], [], []>} : vector<2x32xf32>, vector<32x128xf32>, vector<2x128xf32> -> vector<2x128xf32>
    %249 = arith.addf %247, %248 : vector<2x128xf32>
    %250 = math.tanh %249 : vector<2x128xf32>
    %251 = arith.negf %249 : vector<2x128xf32>
    %252 = math.exp %251 : vector<2x128xf32>
    %cst_28 = arith.constant 1.000000e+00 : f32
    %253 = vector.broadcast %cst_28 : f32 to vector<2x128xf32>
    %254 = arith.addf %253, %252 : vector<2x128xf32>
    %255 = arith.divf %253, %254 : vector<2x128xf32>
    %256 = vector.shape_cast %15 : vector<1x128xi1> to vector<1x128xi1>
    %257 = vector.broadcast %256 : vector<1x128xi1> to vector<2x128xi1>
    %258 = arith.select %257, %250, %255 : vector<2x128xi1>, vector<2x128xf32>
    %259 = vector.extract_strided_slice %258 {offsets = [0, 0], sizes = [2, 32], strides = [1, 1]} : vector<2x128xf32> to vector<2x32xf32>
    %260 = vector.extract_strided_slice %258 {offsets = [0, 32], sizes = [2, 32], strides = [1, 1]} : vector<2x128xf32> to vector<2x32xf32>
    %261 = vector.extract_strided_slice %258 {offsets = [0, 64], sizes = [2, 32], strides = [1, 1]} : vector<2x128xf32> to vector<2x32xf32>
    %262 = vector.extract_strided_slice %258 {offsets = [0, 96], sizes = [2, 32], strides = [1, 1]} : vector<2x128xf32> to vector<2x32xf32>
    %263 = arith.mulf %260, %236 : vector<2x32xf32>
    %264 = arith.mulf %259, %261 : vector<2x32xf32>
    %265 = arith.addf %263, %264 : vector<2x32xf32>
    %266 = math.tanh %265 : vector<2x32xf32>
    %267 = arith.mulf %262, %266 : vector<2x32xf32>
    %268 = vector.extract_strided_slice %19 {offsets = [10, 0], sizes = [2, 1], strides = [1, 1]} : vector<16x1xf32> to vector<2x1xf32>
    %269 = vector.extract_strided_slice %19 {offsets = [4, 0], sizes = [2, 1], strides = [1, 1]} : vector<16x1xf32> to vector<2x1xf32>
    %270 = vector.shape_cast %18 : vector<1x32xi1> to vector<1x32xi1>
    %271 = vector.broadcast %270 : vector<1x32xi1> to vector<2x32xi1>
    %272 = vector.shape_cast %268 : vector<2x1xf32> to vector<2x1xf32>
    %273 = vector.broadcast %272 : vector<2x1xf32> to vector<2x32xf32>
    %274 = vector.shape_cast %269 : vector<2x1xf32> to vector<2x1xf32>
    %275 = vector.broadcast %274 : vector<2x1xf32> to vector<2x32xf32>
    %276 = arith.select %271, %273, %275 : vector<2x32xi1>, vector<2x32xf32>
    %cst_29 = arith.constant 0.000000e+00 : f32
    %277 = vector.broadcast %cst_29 : f32 to vector<2x32xf32>
    %278 = arith.cmpf ogt, %276, %277 : vector<2x32xf32>
    %279 = arith.select %278, %267, %235 : vector<2x32xi1>, vector<2x32xf32>
    %280 = arith.select %278, %265, %236 : vector<2x32xi1>, vector<2x32xf32>
    %281 = vector.extract_strided_slice %267 {offsets = [0, 0], sizes = [2, 16], strides = [1, 1]} : vector<2x32xf32> to vector<2x16xf32>
    %282 = vector.broadcast %268 : vector<2x1xf32> to vector<2x16xf32>
    %283 = arith.mulf %281, %282 : vector<2x16xf32>
    %284 = vector.extract_strided_slice %267 {offsets = [0, 16], sizes = [2, 16], strides = [1, 1]} : vector<2x32xf32> to vector<2x16xf32>
    %285 = vector.broadcast %269 : vector<2x1xf32> to vector<2x16xf32>
    %286 = arith.mulf %284, %285 : vector<2x16xf32>
    %287 = vector.extract_strided_slice %5 {offsets = [12, 0], sizes = [2, 128], strides = [1, 1]} : vector<16x128xf32> to vector<2x128xf32>
    %288 = vector.extract_strided_slice %5 {offsets = [2, 0], sizes = [2, 128], strides = [1, 1]} : vector<16x128xf32> to vector<2x128xf32>
    %289 = vector.shape_cast %10 : vector<1x128xi1> to vector<1x128xi1>
    %290 = vector.broadcast %289 : vector<1x128xi1> to vector<2x128xi1>
    %291 = arith.select %290, %287, %288 : vector<2x128xi1>, vector<2x128xf32>
    %cst_30 = arith.constant dense<0.000000e+00> : vector<2x128xf32>
    %292 = tpu.matmul %279, %22, %cst_30 {dimension_numbers = #tpu.dot_dimension_numbers<[1], [0], [0], [1], [0, 0, 1, 1], [], []>} : vector<2x32xf32>, vector<32x128xf32>, vector<2x128xf32> -> vector<2x128xf32>
    %293 = arith.addf %291, %292 : vector<2x128xf32>
    %294 = math.tanh %293 : vector<2x128xf32>
    %295 = arith.negf %293 : vector<2x128xf32>
    %296 = math.exp %295 : vector<2x128xf32>
    %cst_31 = arith.constant 1.000000e+00 : f32
    %297 = vector.broadcast %cst_31 : f32 to vector<2x128xf32>
    %298 = arith.addf %297, %296 : vector<2x128xf32>
    %299 = arith.divf %297, %298 : vector<2x128xf32>
    %300 = vector.shape_cast %15 : vector<1x128xi1> to vector<1x128xi1>
    %301 = vector.broadcast %300 : vector<1x128xi1> to vector<2x128xi1>
    %302 = arith.select %301, %294, %299 : vector<2x128xi1>, vector<2x128xf32>
    %303 = vector.extract_strided_slice %302 {offsets = [0, 0], sizes = [2, 32], strides = [1, 1]} : vector<2x128xf32> to vector<2x32xf32>
    %304 = vector.extract_strided_slice %302 {offsets = [0, 32], sizes = [2, 32], strides = [1, 1]} : vector<2x128xf32> to vector<2x32xf32>
    %305 = vector.extract_strided_slice %302 {offsets = [0, 64], sizes = [2, 32], strides = [1, 1]} : vector<2x128xf32> to vector<2x32xf32>
    %306 = vector.extract_strided_slice %302 {offsets = [0, 96], sizes = [2, 32], strides = [1, 1]} : vector<2x128xf32> to vector<2x32xf32>
    %307 = arith.mulf %304, %280 : vector<2x32xf32>
    %308 = arith.mulf %303, %305 : vector<2x32xf32>
    %309 = arith.addf %307, %308 : vector<2x32xf32>
    %310 = math.tanh %309 : vector<2x32xf32>
    %311 = arith.mulf %306, %310 : vector<2x32xf32>
    %312 = vector.extract_strided_slice %19 {offsets = [12, 0], sizes = [2, 1], strides = [1, 1]} : vector<16x1xf32> to vector<2x1xf32>
    %313 = vector.extract_strided_slice %19 {offsets = [2, 0], sizes = [2, 1], strides = [1, 1]} : vector<16x1xf32> to vector<2x1xf32>
    %314 = vector.shape_cast %18 : vector<1x32xi1> to vector<1x32xi1>
    %315 = vector.broadcast %314 : vector<1x32xi1> to vector<2x32xi1>
    %316 = vector.shape_cast %312 : vector<2x1xf32> to vector<2x1xf32>
    %317 = vector.broadcast %316 : vector<2x1xf32> to vector<2x32xf32>
    %318 = vector.shape_cast %313 : vector<2x1xf32> to vector<2x1xf32>
    %319 = vector.broadcast %318 : vector<2x1xf32> to vector<2x32xf32>
    %320 = arith.select %315, %317, %319 : vector<2x32xi1>, vector<2x32xf32>
    %cst_32 = arith.constant 0.000000e+00 : f32
    %321 = vector.broadcast %cst_32 : f32 to vector<2x32xf32>
    %322 = arith.cmpf ogt, %320, %321 : vector<2x32xf32>
    %323 = arith.select %322, %311, %279 : vector<2x32xi1>, vector<2x32xf32>
    %324 = arith.select %322, %309, %280 : vector<2x32xi1>, vector<2x32xf32>
    %325 = vector.extract_strided_slice %311 {offsets = [0, 0], sizes = [2, 16], strides = [1, 1]} : vector<2x32xf32> to vector<2x16xf32>
    %326 = vector.broadcast %312 : vector<2x1xf32> to vector<2x16xf32>
    %327 = arith.mulf %325, %326 : vector<2x16xf32>
    %328 = vector.extract_strided_slice %311 {offsets = [0, 16], sizes = [2, 16], strides = [1, 1]} : vector<2x32xf32> to vector<2x16xf32>
    %329 = vector.broadcast %313 : vector<2x1xf32> to vector<2x16xf32>
    %330 = arith.mulf %328, %329 : vector<2x16xf32>
    %331 = vector.extract_strided_slice %5 {offsets = [14, 0], sizes = [2, 128], strides = [1, 1]} : vector<16x128xf32> to vector<2x128xf32>
    %332 = vector.extract_strided_slice %5 {offsets = [0, 0], sizes = [2, 128], strides = [1, 1]} : vector<16x128xf32> to vector<2x128xf32>
    %333 = vector.shape_cast %10 : vector<1x128xi1> to vector<1x128xi1>
    %334 = vector.broadcast %333 : vector<1x128xi1> to vector<2x128xi1>
    %335 = arith.select %334, %331, %332 : vector<2x128xi1>, vector<2x128xf32>
    %cst_33 = arith.constant dense<0.000000e+00> : vector<2x128xf32>
    %336 = tpu.matmul %323, %22, %cst_33 {dimension_numbers = #tpu.dot_dimension_numbers<[1], [0], [0], [1], [0, 0, 1, 1], [], []>} : vector<2x32xf32>, vector<32x128xf32>, vector<2x128xf32> -> vector<2x128xf32>
    %337 = arith.addf %335, %336 : vector<2x128xf32>
    %338 = math.tanh %337 : vector<2x128xf32>
    %339 = arith.negf %337 : vector<2x128xf32>
    %340 = math.exp %339 : vector<2x128xf32>
    %cst_34 = arith.constant 1.000000e+00 : f32
    %341 = vector.broadcast %cst_34 : f32 to vector<2x128xf32>
    %342 = arith.addf %341, %340 : vector<2x128xf32>
    %343 = arith.divf %341, %342 : vector<2x128xf32>
    %344 = vector.shape_cast %15 : vector<1x128xi1> to vector<1x128xi1>
    %345 = vector.broadcast %344 : vector<1x128xi1> to vector<2x128xi1>
    %346 = arith.select %345, %338, %343 : vector<2x128xi1>, vector<2x128xf32>
    %347 = vector.extract_strided_slice %346 {offsets = [0, 0], sizes = [2, 32], strides = [1, 1]} : vector<2x128xf32> to vector<2x32xf32>
    %348 = vector.extract_strided_slice %346 {offsets = [0, 32], sizes = [2, 32], strides = [1, 1]} : vector<2x128xf32> to vector<2x32xf32>
    %349 = vector.extract_strided_slice %346 {offsets = [0, 64], sizes = [2, 32], strides = [1, 1]} : vector<2x128xf32> to vector<2x32xf32>
    %350 = vector.extract_strided_slice %346 {offsets = [0, 96], sizes = [2, 32], strides = [1, 1]} : vector<2x128xf32> to vector<2x32xf32>
    %351 = arith.mulf %348, %324 : vector<2x32xf32>
    %352 = arith.mulf %347, %349 : vector<2x32xf32>
    %353 = arith.addf %351, %352 : vector<2x32xf32>
    %354 = math.tanh %353 : vector<2x32xf32>
    %355 = arith.mulf %350, %354 : vector<2x32xf32>
    %356 = vector.extract_strided_slice %19 {offsets = [14, 0], sizes = [2, 1], strides = [1, 1]} : vector<16x1xf32> to vector<2x1xf32>
    %357 = vector.extract_strided_slice %19 {offsets = [0, 0], sizes = [2, 1], strides = [1, 1]} : vector<16x1xf32> to vector<2x1xf32>
    %358 = vector.extract_strided_slice %355 {offsets = [0, 0], sizes = [2, 16], strides = [1, 1]} : vector<2x32xf32> to vector<2x16xf32>
    %359 = vector.broadcast %356 : vector<2x1xf32> to vector<2x16xf32>
    %360 = arith.mulf %358, %359 : vector<2x16xf32>
    %361 = vector.extract_strided_slice %355 {offsets = [0, 16], sizes = [2, 16], strides = [1, 1]} : vector<2x32xf32> to vector<2x16xf32>
    %362 = vector.broadcast %357 : vector<2x1xf32> to vector<2x16xf32>
    %363 = arith.mulf %361, %362 : vector<2x16xf32>
    %364 = tpu.concatenate %63, %363 in 1 : vector<2x16xf32>, vector<2x16xf32> -> vector<2x32xf32>
    %365 = tpu.concatenate %107, %330 in 1 : vector<2x16xf32>, vector<2x16xf32> -> vector<2x32xf32>
    %366 = tpu.concatenate %151, %286 in 1 : vector<2x16xf32>, vector<2x16xf32> -> vector<2x32xf32>
    %367 = tpu.concatenate %195, %242 in 1 : vector<2x16xf32>, vector<2x16xf32> -> vector<2x32xf32>
    %368 = tpu.concatenate %239, %198 in 1 : vector<2x16xf32>, vector<2x16xf32> -> vector<2x32xf32>
    %369 = tpu.concatenate %283, %154 in 1 : vector<2x16xf32>, vector<2x16xf32> -> vector<2x32xf32>
    %370 = tpu.concatenate %327, %110 in 1 : vector<2x16xf32>, vector<2x16xf32> -> vector<2x32xf32>
    %371 = tpu.concatenate %360, %66 in 1 : vector<2x16xf32>, vector<2x16xf32> -> vector<2x32xf32>
    %372 = tpu.concatenate %364, %365, %366, %367, %368, %369, %370, %371 in 0 : vector<2x32xf32>, vector<2x32xf32>, vector<2x32xf32>, vector<2x32xf32>, vector<2x32xf32>, vector<2x32xf32>, vector<2x32xf32>, vector<2x32xf32> -> vector<16x32xf32>
    %c0_35 = arith.constant 0 : index
    %c0_36 = arith.constant 0 : index
    %373 = vector.load %arg4[%c0_35, %c0_36] : memref<32x8xf32, #tpu.memory_space<vmem>>, vector<32x8xf32>
    %cst_37 = arith.constant dense<0.000000e+00> : vector<16x8xf32>
    %374 = tpu.matmul %372, %373, %cst_37 {dimension_numbers = #tpu.dot_dimension_numbers<[1], [0], [0], [1], [0, 0, 1, 1], [], []>} : vector<16x32xf32>, vector<32x8xf32>, vector<16x8xf32> -> vector<16x8xf32>
    %c0_38 = arith.constant 0 : index
    %c0_39 = arith.constant 0 : index
    %375 = vector.load %arg5[%c0_38, %c0_39] : memref<1x8xf32, #tpu.memory_space<vmem>>, vector<1x8xf32>
    %376 = vector.broadcast %375 : vector<1x8xf32> to vector<16x8xf32>
    %377 = arith.addf %374, %376 : vector<16x8xf32>
    %c0_40 = arith.constant 0 : index
    %c0_41 = arith.constant 0 : index
    %378 = vector.load %arg6[%c0_40, %c0_41] : memref<8x8xf32, #tpu.memory_space<vmem>>, vector<8x8xf32>
    %379 = vector.shape_cast %378 : vector<8x8xf32> to vector<1x8x8xf32>
    %380 = vector.shape_cast %379 : vector<1x8x8xf32> to vector<1x8x8xf32>
    %381 = vector.broadcast %380 : vector<1x8x8xf32> to vector<2x8x8xf32>
    %c0_42 = arith.constant 0 : index
    %c0_43 = arith.constant 0 : index
    %382 = vector.load %arg7[%c0_42, %c0_43] : memref<1x8xf32, #tpu.memory_space<vmem>>, vector<1x8xf32>
    %c0_44 = arith.constant 0 : index
    %c0_45 = arith.constant 0 : index
    %383 = vector.load %arg8[%c0_44, %c0_45] : memref<1x8xf32, #tpu.memory_space<vmem>>, vector<1x8xf32>
    %c0_46 = arith.constant 0 : index
    %c0_47 = arith.constant 0 : index
    %384 = vector.load %arg9[%c0_46, %c0_47] : memref<16x8xf32, #tpu.memory_space<vmem>>, vector<16x8xf32>
    %385 = vector.extract_strided_slice %377 {offsets = [0, 0], sizes = [2, 8], strides = [1, 1]} : vector<16x8xf32> to vector<2x8xf32>
    %386 = vector.extract_strided_slice %384 {offsets = [0, 0], sizes = [2, 8], strides = [1, 1]} : vector<16x8xf32> to vector<2x8xf32>
    %387 = vector.broadcast %382 : vector<1x8xf32> to vector<2x8xf32>
    %388 = arith.addf %387, %385 : vector<2x8xf32>
    %389 = vector.broadcast %382 : vector<1x8xf32> to vector<2x8xf32>
    %390 = arith.addf %385, %389 : vector<2x8xf32>
    %391 = arith.mulf %386, %390 : vector<2x8xf32>
    %cst_48 = arith.constant dense<0.000000e+00> : vector<2xf32>
    %392 = vector.multi_reduction <add>, %391, %cst_48 [1] : vector<2x8xf32> to vector<2xf32>
    %393 = vector.shape_cast %392 : vector<2xf32> to vector<2x1xf32>
    %394 = vector.extract_strided_slice %377 {offsets = [2, 0], sizes = [2, 8], strides = [1, 1]} : vector<16x8xf32> to vector<2x8xf32>
    %395 = vector.extract_strided_slice %384 {offsets = [2, 0], sizes = [2, 8], strides = [1, 1]} : vector<16x8xf32> to vector<2x8xf32>
    %396 = vector.extract_strided_slice %384 {offsets = [0, 0], sizes = [2, 8], strides = [1, 1]} : vector<16x8xf32> to vector<2x8xf32>
    %397 = vector.extract_strided_slice %19 {offsets = [2, 0], sizes = [2, 1], strides = [1, 1]} : vector<16x1xf32> to vector<2x1xf32>
    %398 = vector.shape_cast %388 : vector<2x8xf32> to vector<2x8x1xf32>
    %399 = vector.broadcast %398 : vector<2x8x1xf32> to vector<2x8x8xf32>
    %400 = arith.addf %399, %381 : vector<2x8x8xf32>
    %cst_49 = arith.constant dense<0xFF800000> : vector<2x8xf32>
    %401 = vector.multi_reduction <maximumf>, %400, %cst_49 [1] : vector<2x8x8xf32> to vector<2x8xf32>
    %402 = vector.shape_cast %401 : vector<2x8xf32> to vector<2x1x8xf32>
    %403 = vector.broadcast %402 : vector<2x1x8xf32> to vector<2x8x8xf32>
    %404 = arith.subf %400, %403 : vector<2x8x8xf32>
    %405 = math.exp %404 : vector<2x8x8xf32>
    %cst_50 = arith.constant dense<0.000000e+00> : vector<2x8xf32>
    %406 = vector.multi_reduction <add>, %405, %cst_50 [1] : vector<2x8x8xf32> to vector<2x8xf32>
    %407 = math.log %406 : vector<2x8xf32>
    %408 = arith.addf %407, %401 : vector<2x8xf32>
    %cst_51 = arith.constant 0.000000e+00 : f32
    %409 = vector.broadcast %cst_51 : f32 to vector<2x1xf32>
    %410 = arith.cmpf ogt, %397, %409 : vector<2x1xf32>
    %411 = arith.addf %408, %394 : vector<2x8xf32>
    %412 = vector.shape_cast %410 : vector<2x1xi1> to vector<2x1xi1>
    %413 = vector.broadcast %412 : vector<2x1xi1> to vector<2x8xi1>
    %414 = arith.select %413, %411, %388 : vector<2x8xi1>, vector<2x8xf32>
    %415 = vector.shape_cast %396 : vector<2x8xf32> to vector<2x8x1xf32>
    %416 = vector.broadcast %415 : vector<2x8x1xf32> to vector<2x8x8xf32>
    %417 = arith.mulf %416, %381 : vector<2x8x8xf32>
    %cst_52 = arith.constant dense<0.000000e+00> : vector<2x8xf32>
    %418 = vector.multi_reduction <add>, %417, %cst_52 [1] : vector<2x8x8xf32> to vector<2x8xf32>
    %419 = arith.addf %394, %418 : vector<2x8xf32>
    %420 = arith.mulf %395, %419 : vector<2x8xf32>
    %cst_53 = arith.constant dense<0.000000e+00> : vector<2xf32>
    %421 = vector.multi_reduction <add>, %420, %cst_53 [1] : vector<2x8xf32> to vector<2xf32>
    %422 = vector.shape_cast %421 : vector<2xf32> to vector<2x1xf32>
    %423 = arith.addf %393, %422 : vector<2x1xf32>
    %424 = vector.extract_strided_slice %377 {offsets = [4, 0], sizes = [2, 8], strides = [1, 1]} : vector<16x8xf32> to vector<2x8xf32>
    %425 = vector.extract_strided_slice %384 {offsets = [4, 0], sizes = [2, 8], strides = [1, 1]} : vector<16x8xf32> to vector<2x8xf32>
    %426 = vector.extract_strided_slice %384 {offsets = [2, 0], sizes = [2, 8], strides = [1, 1]} : vector<16x8xf32> to vector<2x8xf32>
    %427 = vector.extract_strided_slice %19 {offsets = [4, 0], sizes = [2, 1], strides = [1, 1]} : vector<16x1xf32> to vector<2x1xf32>
    %428 = vector.shape_cast %414 : vector<2x8xf32> to vector<2x8x1xf32>
    %429 = vector.broadcast %428 : vector<2x8x1xf32> to vector<2x8x8xf32>
    %430 = arith.addf %429, %381 : vector<2x8x8xf32>
    %cst_54 = arith.constant dense<0xFF800000> : vector<2x8xf32>
    %431 = vector.multi_reduction <maximumf>, %430, %cst_54 [1] : vector<2x8x8xf32> to vector<2x8xf32>
    %432 = vector.shape_cast %431 : vector<2x8xf32> to vector<2x1x8xf32>
    %433 = vector.broadcast %432 : vector<2x1x8xf32> to vector<2x8x8xf32>
    %434 = arith.subf %430, %433 : vector<2x8x8xf32>
    %435 = math.exp %434 : vector<2x8x8xf32>
    %cst_55 = arith.constant dense<0.000000e+00> : vector<2x8xf32>
    %436 = vector.multi_reduction <add>, %435, %cst_55 [1] : vector<2x8x8xf32> to vector<2x8xf32>
    %437 = math.log %436 : vector<2x8xf32>
    %438 = arith.addf %437, %431 : vector<2x8xf32>
    %cst_56 = arith.constant 0.000000e+00 : f32
    %439 = vector.broadcast %cst_56 : f32 to vector<2x1xf32>
    %440 = arith.cmpf ogt, %427, %439 : vector<2x1xf32>
    %441 = arith.addf %438, %424 : vector<2x8xf32>
    %442 = vector.shape_cast %440 : vector<2x1xi1> to vector<2x1xi1>
    %443 = vector.broadcast %442 : vector<2x1xi1> to vector<2x8xi1>
    %444 = arith.select %443, %441, %414 : vector<2x8xi1>, vector<2x8xf32>
    %445 = vector.shape_cast %426 : vector<2x8xf32> to vector<2x8x1xf32>
    %446 = vector.broadcast %445 : vector<2x8x1xf32> to vector<2x8x8xf32>
    %447 = arith.mulf %446, %381 : vector<2x8x8xf32>
    %cst_57 = arith.constant dense<0.000000e+00> : vector<2x8xf32>
    %448 = vector.multi_reduction <add>, %447, %cst_57 [1] : vector<2x8x8xf32> to vector<2x8xf32>
    %449 = arith.addf %424, %448 : vector<2x8xf32>
    %450 = arith.mulf %425, %449 : vector<2x8xf32>
    %cst_58 = arith.constant dense<0.000000e+00> : vector<2xf32>
    %451 = vector.multi_reduction <add>, %450, %cst_58 [1] : vector<2x8xf32> to vector<2xf32>
    %452 = vector.shape_cast %451 : vector<2xf32> to vector<2x1xf32>
    %453 = arith.addf %423, %452 : vector<2x1xf32>
    %454 = vector.extract_strided_slice %377 {offsets = [6, 0], sizes = [2, 8], strides = [1, 1]} : vector<16x8xf32> to vector<2x8xf32>
    %455 = vector.extract_strided_slice %384 {offsets = [6, 0], sizes = [2, 8], strides = [1, 1]} : vector<16x8xf32> to vector<2x8xf32>
    %456 = vector.extract_strided_slice %384 {offsets = [4, 0], sizes = [2, 8], strides = [1, 1]} : vector<16x8xf32> to vector<2x8xf32>
    %457 = vector.extract_strided_slice %19 {offsets = [6, 0], sizes = [2, 1], strides = [1, 1]} : vector<16x1xf32> to vector<2x1xf32>
    %458 = vector.shape_cast %444 : vector<2x8xf32> to vector<2x8x1xf32>
    %459 = vector.broadcast %458 : vector<2x8x1xf32> to vector<2x8x8xf32>
    %460 = arith.addf %459, %381 : vector<2x8x8xf32>
    %cst_59 = arith.constant dense<0xFF800000> : vector<2x8xf32>
    %461 = vector.multi_reduction <maximumf>, %460, %cst_59 [1] : vector<2x8x8xf32> to vector<2x8xf32>
    %462 = vector.shape_cast %461 : vector<2x8xf32> to vector<2x1x8xf32>
    %463 = vector.broadcast %462 : vector<2x1x8xf32> to vector<2x8x8xf32>
    %464 = arith.subf %460, %463 : vector<2x8x8xf32>
    %465 = math.exp %464 : vector<2x8x8xf32>
    %cst_60 = arith.constant dense<0.000000e+00> : vector<2x8xf32>
    %466 = vector.multi_reduction <add>, %465, %cst_60 [1] : vector<2x8x8xf32> to vector<2x8xf32>
    %467 = math.log %466 : vector<2x8xf32>
    %468 = arith.addf %467, %461 : vector<2x8xf32>
    %cst_61 = arith.constant 0.000000e+00 : f32
    %469 = vector.broadcast %cst_61 : f32 to vector<2x1xf32>
    %470 = arith.cmpf ogt, %457, %469 : vector<2x1xf32>
    %471 = arith.addf %468, %454 : vector<2x8xf32>
    %472 = vector.shape_cast %470 : vector<2x1xi1> to vector<2x1xi1>
    %473 = vector.broadcast %472 : vector<2x1xi1> to vector<2x8xi1>
    %474 = arith.select %473, %471, %444 : vector<2x8xi1>, vector<2x8xf32>
    %475 = vector.shape_cast %456 : vector<2x8xf32> to vector<2x8x1xf32>
    %476 = vector.broadcast %475 : vector<2x8x1xf32> to vector<2x8x8xf32>
    %477 = arith.mulf %476, %381 : vector<2x8x8xf32>
    %cst_62 = arith.constant dense<0.000000e+00> : vector<2x8xf32>
    %478 = vector.multi_reduction <add>, %477, %cst_62 [1] : vector<2x8x8xf32> to vector<2x8xf32>
    %479 = arith.addf %454, %478 : vector<2x8xf32>
    %480 = arith.mulf %455, %479 : vector<2x8xf32>
    %cst_63 = arith.constant dense<0.000000e+00> : vector<2xf32>
    %481 = vector.multi_reduction <add>, %480, %cst_63 [1] : vector<2x8xf32> to vector<2xf32>
    %482 = vector.shape_cast %481 : vector<2xf32> to vector<2x1xf32>
    %483 = arith.addf %453, %482 : vector<2x1xf32>
    %484 = vector.extract_strided_slice %377 {offsets = [8, 0], sizes = [2, 8], strides = [1, 1]} : vector<16x8xf32> to vector<2x8xf32>
    %485 = vector.extract_strided_slice %384 {offsets = [8, 0], sizes = [2, 8], strides = [1, 1]} : vector<16x8xf32> to vector<2x8xf32>
    %486 = vector.extract_strided_slice %384 {offsets = [6, 0], sizes = [2, 8], strides = [1, 1]} : vector<16x8xf32> to vector<2x8xf32>
    %487 = vector.extract_strided_slice %19 {offsets = [8, 0], sizes = [2, 1], strides = [1, 1]} : vector<16x1xf32> to vector<2x1xf32>
    %488 = vector.shape_cast %474 : vector<2x8xf32> to vector<2x8x1xf32>
    %489 = vector.broadcast %488 : vector<2x8x1xf32> to vector<2x8x8xf32>
    %490 = arith.addf %489, %381 : vector<2x8x8xf32>
    %cst_64 = arith.constant dense<0xFF800000> : vector<2x8xf32>
    %491 = vector.multi_reduction <maximumf>, %490, %cst_64 [1] : vector<2x8x8xf32> to vector<2x8xf32>
    %492 = vector.shape_cast %491 : vector<2x8xf32> to vector<2x1x8xf32>
    %493 = vector.broadcast %492 : vector<2x1x8xf32> to vector<2x8x8xf32>
    %494 = arith.subf %490, %493 : vector<2x8x8xf32>
    %495 = math.exp %494 : vector<2x8x8xf32>
    %cst_65 = arith.constant dense<0.000000e+00> : vector<2x8xf32>
    %496 = vector.multi_reduction <add>, %495, %cst_65 [1] : vector<2x8x8xf32> to vector<2x8xf32>
    %497 = math.log %496 : vector<2x8xf32>
    %498 = arith.addf %497, %491 : vector<2x8xf32>
    %cst_66 = arith.constant 0.000000e+00 : f32
    %499 = vector.broadcast %cst_66 : f32 to vector<2x1xf32>
    %500 = arith.cmpf ogt, %487, %499 : vector<2x1xf32>
    %501 = arith.addf %498, %484 : vector<2x8xf32>
    %502 = vector.shape_cast %500 : vector<2x1xi1> to vector<2x1xi1>
    %503 = vector.broadcast %502 : vector<2x1xi1> to vector<2x8xi1>
    %504 = arith.select %503, %501, %474 : vector<2x8xi1>, vector<2x8xf32>
    %505 = vector.shape_cast %486 : vector<2x8xf32> to vector<2x8x1xf32>
    %506 = vector.broadcast %505 : vector<2x8x1xf32> to vector<2x8x8xf32>
    %507 = arith.mulf %506, %381 : vector<2x8x8xf32>
    %cst_67 = arith.constant dense<0.000000e+00> : vector<2x8xf32>
    %508 = vector.multi_reduction <add>, %507, %cst_67 [1] : vector<2x8x8xf32> to vector<2x8xf32>
    %509 = arith.addf %484, %508 : vector<2x8xf32>
    %510 = arith.mulf %485, %509 : vector<2x8xf32>
    %cst_68 = arith.constant dense<0.000000e+00> : vector<2xf32>
    %511 = vector.multi_reduction <add>, %510, %cst_68 [1] : vector<2x8xf32> to vector<2xf32>
    %512 = vector.shape_cast %511 : vector<2xf32> to vector<2x1xf32>
    %513 = arith.addf %483, %512 : vector<2x1xf32>
    %514 = vector.extract_strided_slice %377 {offsets = [10, 0], sizes = [2, 8], strides = [1, 1]} : vector<16x8xf32> to vector<2x8xf32>
    %515 = vector.extract_strided_slice %384 {offsets = [10, 0], sizes = [2, 8], strides = [1, 1]} : vector<16x8xf32> to vector<2x8xf32>
    %516 = vector.extract_strided_slice %384 {offsets = [8, 0], sizes = [2, 8], strides = [1, 1]} : vector<16x8xf32> to vector<2x8xf32>
    %517 = vector.extract_strided_slice %19 {offsets = [10, 0], sizes = [2, 1], strides = [1, 1]} : vector<16x1xf32> to vector<2x1xf32>
    %518 = vector.shape_cast %504 : vector<2x8xf32> to vector<2x8x1xf32>
    %519 = vector.broadcast %518 : vector<2x8x1xf32> to vector<2x8x8xf32>
    %520 = arith.addf %519, %381 : vector<2x8x8xf32>
    %cst_69 = arith.constant dense<0xFF800000> : vector<2x8xf32>
    %521 = vector.multi_reduction <maximumf>, %520, %cst_69 [1] : vector<2x8x8xf32> to vector<2x8xf32>
    %522 = vector.shape_cast %521 : vector<2x8xf32> to vector<2x1x8xf32>
    %523 = vector.broadcast %522 : vector<2x1x8xf32> to vector<2x8x8xf32>
    %524 = arith.subf %520, %523 : vector<2x8x8xf32>
    %525 = math.exp %524 : vector<2x8x8xf32>
    %cst_70 = arith.constant dense<0.000000e+00> : vector<2x8xf32>
    %526 = vector.multi_reduction <add>, %525, %cst_70 [1] : vector<2x8x8xf32> to vector<2x8xf32>
    %527 = math.log %526 : vector<2x8xf32>
    %528 = arith.addf %527, %521 : vector<2x8xf32>
    %cst_71 = arith.constant 0.000000e+00 : f32
    %529 = vector.broadcast %cst_71 : f32 to vector<2x1xf32>
    %530 = arith.cmpf ogt, %517, %529 : vector<2x1xf32>
    %531 = arith.addf %528, %514 : vector<2x8xf32>
    %532 = vector.shape_cast %530 : vector<2x1xi1> to vector<2x1xi1>
    %533 = vector.broadcast %532 : vector<2x1xi1> to vector<2x8xi1>
    %534 = arith.select %533, %531, %504 : vector<2x8xi1>, vector<2x8xf32>
    %535 = vector.shape_cast %516 : vector<2x8xf32> to vector<2x8x1xf32>
    %536 = vector.broadcast %535 : vector<2x8x1xf32> to vector<2x8x8xf32>
    %537 = arith.mulf %536, %381 : vector<2x8x8xf32>
    %cst_72 = arith.constant dense<0.000000e+00> : vector<2x8xf32>
    %538 = vector.multi_reduction <add>, %537, %cst_72 [1] : vector<2x8x8xf32> to vector<2x8xf32>
    %539 = arith.addf %514, %538 : vector<2x8xf32>
    %540 = arith.mulf %515, %539 : vector<2x8xf32>
    %cst_73 = arith.constant dense<0.000000e+00> : vector<2xf32>
    %541 = vector.multi_reduction <add>, %540, %cst_73 [1] : vector<2x8xf32> to vector<2xf32>
    %542 = vector.shape_cast %541 : vector<2xf32> to vector<2x1xf32>
    %543 = arith.addf %513, %542 : vector<2x1xf32>
    %544 = vector.extract_strided_slice %377 {offsets = [12, 0], sizes = [2, 8], strides = [1, 1]} : vector<16x8xf32> to vector<2x8xf32>
    %545 = vector.extract_strided_slice %384 {offsets = [12, 0], sizes = [2, 8], strides = [1, 1]} : vector<16x8xf32> to vector<2x8xf32>
    %546 = vector.extract_strided_slice %384 {offsets = [10, 0], sizes = [2, 8], strides = [1, 1]} : vector<16x8xf32> to vector<2x8xf32>
    %547 = vector.extract_strided_slice %19 {offsets = [12, 0], sizes = [2, 1], strides = [1, 1]} : vector<16x1xf32> to vector<2x1xf32>
    %548 = vector.shape_cast %534 : vector<2x8xf32> to vector<2x8x1xf32>
    %549 = vector.broadcast %548 : vector<2x8x1xf32> to vector<2x8x8xf32>
    %550 = arith.addf %549, %381 : vector<2x8x8xf32>
    %cst_74 = arith.constant dense<0xFF800000> : vector<2x8xf32>
    %551 = vector.multi_reduction <maximumf>, %550, %cst_74 [1] : vector<2x8x8xf32> to vector<2x8xf32>
    %552 = vector.shape_cast %551 : vector<2x8xf32> to vector<2x1x8xf32>
    %553 = vector.broadcast %552 : vector<2x1x8xf32> to vector<2x8x8xf32>
    %554 = arith.subf %550, %553 : vector<2x8x8xf32>
    %555 = math.exp %554 : vector<2x8x8xf32>
    %cst_75 = arith.constant dense<0.000000e+00> : vector<2x8xf32>
    %556 = vector.multi_reduction <add>, %555, %cst_75 [1] : vector<2x8x8xf32> to vector<2x8xf32>
    %557 = math.log %556 : vector<2x8xf32>
    %558 = arith.addf %557, %551 : vector<2x8xf32>
    %cst_76 = arith.constant 0.000000e+00 : f32
    %559 = vector.broadcast %cst_76 : f32 to vector<2x1xf32>
    %560 = arith.cmpf ogt, %547, %559 : vector<2x1xf32>
    %561 = arith.addf %558, %544 : vector<2x8xf32>
    %562 = vector.shape_cast %560 : vector<2x1xi1> to vector<2x1xi1>
    %563 = vector.broadcast %562 : vector<2x1xi1> to vector<2x8xi1>
    %564 = arith.select %563, %561, %534 : vector<2x8xi1>, vector<2x8xf32>
    %565 = vector.shape_cast %546 : vector<2x8xf32> to vector<2x8x1xf32>
    %566 = vector.broadcast %565 : vector<2x8x1xf32> to vector<2x8x8xf32>
    %567 = arith.mulf %566, %381 : vector<2x8x8xf32>
    %cst_77 = arith.constant dense<0.000000e+00> : vector<2x8xf32>
    %568 = vector.multi_reduction <add>, %567, %cst_77 [1] : vector<2x8x8xf32> to vector<2x8xf32>
    %569 = arith.addf %544, %568 : vector<2x8xf32>
    %570 = arith.mulf %545, %569 : vector<2x8xf32>
    %cst_78 = arith.constant dense<0.000000e+00> : vector<2xf32>
    %571 = vector.multi_reduction <add>, %570, %cst_78 [1] : vector<2x8xf32> to vector<2xf32>
    %572 = vector.shape_cast %571 : vector<2xf32> to vector<2x1xf32>
    %573 = arith.addf %543, %572 : vector<2x1xf32>
    %574 = vector.extract_strided_slice %377 {offsets = [14, 0], sizes = [2, 8], strides = [1, 1]} : vector<16x8xf32> to vector<2x8xf32>
    %575 = vector.extract_strided_slice %384 {offsets = [14, 0], sizes = [2, 8], strides = [1, 1]} : vector<16x8xf32> to vector<2x8xf32>
    %576 = vector.extract_strided_slice %384 {offsets = [12, 0], sizes = [2, 8], strides = [1, 1]} : vector<16x8xf32> to vector<2x8xf32>
    %577 = vector.extract_strided_slice %19 {offsets = [14, 0], sizes = [2, 1], strides = [1, 1]} : vector<16x1xf32> to vector<2x1xf32>
    %578 = vector.shape_cast %564 : vector<2x8xf32> to vector<2x8x1xf32>
    %579 = vector.broadcast %578 : vector<2x8x1xf32> to vector<2x8x8xf32>
    %580 = arith.addf %579, %381 : vector<2x8x8xf32>
    %cst_79 = arith.constant dense<0xFF800000> : vector<2x8xf32>
    %581 = vector.multi_reduction <maximumf>, %580, %cst_79 [1] : vector<2x8x8xf32> to vector<2x8xf32>
    %582 = vector.shape_cast %581 : vector<2x8xf32> to vector<2x1x8xf32>
    %583 = vector.broadcast %582 : vector<2x1x8xf32> to vector<2x8x8xf32>
    %584 = arith.subf %580, %583 : vector<2x8x8xf32>
    %585 = math.exp %584 : vector<2x8x8xf32>
    %cst_80 = arith.constant dense<0.000000e+00> : vector<2x8xf32>
    %586 = vector.multi_reduction <add>, %585, %cst_80 [1] : vector<2x8x8xf32> to vector<2x8xf32>
    %587 = math.log %586 : vector<2x8xf32>
    %588 = arith.addf %587, %581 : vector<2x8xf32>
    %cst_81 = arith.constant 0.000000e+00 : f32
    %589 = vector.broadcast %cst_81 : f32 to vector<2x1xf32>
    %590 = arith.cmpf ogt, %577, %589 : vector<2x1xf32>
    %591 = arith.addf %588, %574 : vector<2x8xf32>
    %592 = vector.shape_cast %590 : vector<2x1xi1> to vector<2x1xi1>
    %593 = vector.broadcast %592 : vector<2x1xi1> to vector<2x8xi1>
    %594 = arith.select %593, %591, %564 : vector<2x8xi1>, vector<2x8xf32>
    %595 = vector.shape_cast %576 : vector<2x8xf32> to vector<2x8x1xf32>
    %596 = vector.broadcast %595 : vector<2x8x1xf32> to vector<2x8x8xf32>
    %597 = arith.mulf %596, %381 : vector<2x8x8xf32>
    %cst_82 = arith.constant dense<0.000000e+00> : vector<2x8xf32>
    %598 = vector.multi_reduction <add>, %597, %cst_82 [1] : vector<2x8x8xf32> to vector<2x8xf32>
    %599 = arith.addf %574, %598 : vector<2x8xf32>
    %600 = arith.mulf %575, %599 : vector<2x8xf32>
    %cst_83 = arith.constant dense<0.000000e+00> : vector<2xf32>
    %601 = vector.multi_reduction <add>, %600, %cst_83 [1] : vector<2x8xf32> to vector<2xf32>
    %602 = vector.shape_cast %601 : vector<2xf32> to vector<2x1xf32>
    %603 = arith.addf %573, %602 : vector<2x1xf32>
    %604 = vector.broadcast %383 : vector<1x8xf32> to vector<2x8xf32>
    %605 = arith.addf %594, %604 : vector<2x8xf32>
    %cst_84 = arith.constant dense<0xFF800000> : vector<2xf32>
    %606 = vector.multi_reduction <maximumf>, %605, %cst_84 [1] : vector<2x8xf32> to vector<2xf32>
    %607 = vector.shape_cast %606 : vector<2xf32> to vector<2x1xf32>
    %608 = vector.broadcast %607 : vector<2x1xf32> to vector<2x8xf32>
    %609 = arith.subf %605, %608 : vector<2x8xf32>
    %610 = math.exp %609 : vector<2x8xf32>
    %cst_85 = arith.constant dense<0.000000e+00> : vector<2xf32>
    %611 = vector.multi_reduction <add>, %610, %cst_85 [1] : vector<2x8xf32> to vector<2xf32>
    %612 = vector.shape_cast %611 : vector<2xf32> to vector<2x1xf32>
    %613 = math.log %612 : vector<2x1xf32>
    %614 = arith.addf %613, %607 : vector<2x1xf32>
    %c0_86 = arith.constant 0 : index
    %c0_87 = arith.constant 0 : index
    %615 = vector.load %arg11[%c0_86, %c0_87] : memref<2x8xf32, #tpu.memory_space<vmem>>, vector<2x8xf32>
    %616 = vector.broadcast %383 : vector<1x8xf32> to vector<2x8xf32>
    %617 = arith.mulf %615, %616 : vector<2x8xf32>
    %cst_88 = arith.constant dense<0.000000e+00> : vector<2xf32>
    %618 = vector.multi_reduction <add>, %617, %cst_88 [1] : vector<2x8xf32> to vector<2xf32>
    %619 = vector.shape_cast %618 : vector<2xf32> to vector<2x1xf32>
    %620 = arith.addf %603, %619 : vector<2x1xf32>
    %621 = arith.subf %614, %620 : vector<2x1xf32>
    %cst_89 = arith.constant dense<0.000000e+00> : vector<1xf32>
    %622 = vector.multi_reduction <add>, %621, %cst_89 [0] : vector<2x1xf32> to vector<1xf32>
    %623 = vector.shape_cast %622 : vector<1xf32> to vector<1x1xf32>
    %c0_90 = arith.constant 0 : index
    %c0_91 = arith.constant 0 : index
    %624 = vector.load %arg12[%c0_90, %c0_91] : memref<1x1xf32, #tpu.memory_space<vmem>>, vector<1x1xf32>
    tpu.vector_store %arg12[%c0_90, %c0_91], %623 {strides = array<i32>} : memref<1x1xf32, #tpu.memory_space<vmem>>, vector<1x1xf32>,
    return
  }
}

</mosaic_0001>

<bundles_post_ra>
// kernel: transformers_crf_forward.1
= control target key start
LH: loop header
LB: loop body
LE: loop exit
PB: predicated region body
PF: predicated region fallthrough
CT: control target
= control target key end

     0   :  { %vm55_vm0 = vcmask 261120   ;;  %v2636_v5 = vmov 0.0|0.0   ;;  %vm2637_vm1 = vmmov 0   ;;  %v2638_v12 = vmov 0.0   ;;  %s3370_s0 = inlined_call_operand.vmem [shape: f32[16,32], index: 0, kind: input, shape index: {}]   ;;  %s3371_s1 = inlined_call_operand.vmem [shape: f32[32,128], index: 1, kind: input, shape index: {}]   ;;  %s3372_s2 = inlined_call_operand.vmem [shape: f32[1,128], index: 2, kind: input, shape index: {}]   ;;  %s3373_s3 = inlined_call_operand.vmem [shape: f32[32,128], index: 3, kind: input, shape index: {}]   ;;  %s3374_s4 = inlined_call_operand.vmem [shape: f32[32,8], index: 4, kind: input, shape index: {}]   ;;  %s3375_s5 = inlined_call_operand.vmem [shape: f32[1,8], index: 5, kind: input, shape index: {}]   ;;  %s3376_s6 = inlined_call_operand.vmem [shape: f32[8,8], index: 6, kind: input, shape index: {}]   ;;  %s3377_s7 = inlined_call_operand.vmem [shape: f32[1,8], index: 7, kind: input, shape index: {}]   ;;  %s3378_s8 = inlined_call_operand.vmem [shape: f32[1,8], index: 8, kind: input, shape index: {}]   ;;  %s3379_s9 = inlined_call_operand.vmem [shape: f32[16,8], index: 9, kind: input, shape index: {}]   ;;  %s3380_s10 = inlined_call_operand.vmem [shape: f32[16,1], index: 10, kind: input, shape index: {}]   ;;  %s3381_s11 = inlined_call_operand.vmem [shape: f32[2,8], index: 11, kind: input, shape index: {}]   ;;  %s3382_s12 = inlined_call_operand.hbm [shape: f32[1,1], index: 12, kind: output, shape index: {}]  }
   0x1   :  { %v44_v0 = vld [vmem:[%s3371_s1] sm:$0xff]  ;;  %v45_v1 = vld [vmem:[%s3371_s1 + $0x8] sm:$0xff]  ;;  %v46_v2 = vld [vmem:[%s3371_s1 + $0x10] sm:$0xff]  ;;  %2420 = vmatprep.subr.bf16.mxu1 %v2636_v5  ;;  %2321 = vmatprep.mubr.msk.f32.mxu1 %vm2637_vm1, %v2638_v12 }
   0x2   :  { %v2412_v3 = vpack.c.bf16 %v45_v1, %v44_v0  ;;  %v47_v4 = vld [vmem:[%s3371_s1 + $0x18] sm:$0xff]  ;;  %v147_v6 = vld [vmem:[%s3373_s3] sm:$0xff]  ;;  %v148_v7 = vld [vmem:[%s3373_s3 + $0x8] sm:$0xff] }
   0x3   :  { %v2416_v8 = vpack.c.bf16 %v47_v4, %v46_v2  ;;  %v2728_v9 = vpack.c.bf16 %v148_v7, %v147_v6  ;;  %v42_v10 = vld [vmem:[%s3370_s0] sm:$0xff]  ;;  %v149_v11 = vld [vmem:[%s3373_s3 + $0x10] sm:$0xff]  ;;  %v150_v13 = vld [vmem:[%s3373_s3 + $0x18] sm:$0xff] }
   0x4   :  { %2413 = vmatprep.subr.bf16.mxu0 %v2412_v3  ;;  %2310 = vmatprep.mubr.msk.f32.mxu0 %vm55_vm0, %v42_v10 }
   0x5   :  { %17 = vsyncpa [#allocation3], 0  ;;  %2415 = vmatpush3.bf16.msra.mxu0 %v2412_v3  ;;  %2422 = vmatpush3.bf16.msra.mxu1 %v2728_v9  ;;  %v2743_v14 = vpack.c.bf16 %v150_v13, %v149_v11  ;;  %v43_v15 = vld [vmem:[%s3370_s0 + $0x8] sm:$0xff]  ;;  %v137_v16 = vlaneseq  ;;  %v2227_v18 = vld [vmem:[%s3372_s2] ss:$0 sm:$0xff]  ;;  %s2639_s2 = smov 64  }
   0x6   :  { %2417 = vmatprep.subr.bf16.mxu0 %v2416_v8  ;;  %2423 = vmatprep.subr.bf16.mxu1 %v2636_v5  ;;  %v2640_v42 = vmov 0   ;;  %s2641_s22 = smov 32   ;;  %v2797_v45 = vld [vmem:[%s3380_s10] sm:$0xff]  ;;  %v146_v50 = vld [vmem:[%s3380_s10 + $0x8] sm:$0xff]  ;;  %s2642_s27 = smov 96   ;;  %vm1159_vm11 = vcmask 130048  }
   0x7   :  { %v2767_v17 = vand.u32 127, %v137_v16  ;;  %2485 = vset.pattern.permute.xlu0 %v2640_v42  ;;  %2484 = vset.pattern.permute.xlu1 %v2640_v42  ;;  %vm1231_vm12 = vcmask 1041408   ;;  %vm1235_vm13 = vcmask 1045504   ;;  %vm1233_vm14 = vcmask 1043456  }
   0x8   :  { %vm1406_vm15 = vcmp.gt.f32.partialorder %v2797_v45, 0.0 }
   0x9   :  { %2419 = vmatpush3.bf16.msra.mxu0 %v2416_v8  ;;  %2425 = vmatpush3.bf16.msra.mxu1 %v2743_v14  ;;  %v139_v19 = vand.u32 31, %v2767_v17  ;;  %vm141_vm3 = vcmp.ge.s32.totalorder %v2767_v17, 64  ;;  %vm142_vm4 = vcmp.lt.s32.totalorder %v2767_v17, 96  ;;  %vm144_vm6 = vcmp.lt.s32.totalorder %v2767_v17, 16 }
   0xa   :  { %2426 = vmatprep.subr.bf16.mxu0 %v2636_v5  ;;  %2432 = vmatprep.subr.bf16.mxu1 %v2636_v5  ;;  %vm2784_vm5 = vmand %vm141_vm3, %vm142_vm4  ;;  %vm1540_vm3 = vcmask 1045509   ;;  %vm1657_vm4 = vcmask 1047559  }
   0xb   :  { %vm140_vm2 = vcmp.lt.s32.totalorder %v139_v19, 16 }
   0xc   :  { %2311 = vmatmul.mubr.msk.f32.vlgmr.msra.gmra.mrb[0].mxu0 %vm55_vm0, %v43_v15  ;;  %2322 = vmatmul.mubr.f32.vlgmr.msra.gmra.mrb[0].mxu1 %v2638_v12 }
   0xd   :  { %2428 = vmatpush3.bf16.msra.mxu0 %v2728_v9  ;;  %2332 = vmatprep.mubr.msk.f32.mxu0 %vm2637_vm1, %v2638_v12 }
   0xe   :  { %2429 = vmatprep.subr.bf16.mxu0 %v2636_v5  ;;  %2434 = vmatpush3.bf16.msra.mxu1 %v2728_v9 }
   0xf   :  { %2435 = vmatprep.subr.bf16.mxu1 %v2636_v5  ;;  %2343 = vmatprep.mubr.msk.f32.mxu1 %vm2637_vm1, %v2638_v12 }
  0x11   :  { %2431 = vmatpush3.bf16.msra.mxu0 %v2743_v14 }
  0x12   :  { %2437 = vmatpush3.bf16.msra.mxu1 %v2743_v14  ;;  %2438 = vmatprep.subr.bf16.mxu0 %v2636_v5 }
  0x13   :  { %2444 = vmatprep.subr.bf16.mxu1 %v2636_v5 }
  0xdf   :  { %v2312_v20 = vpop.f32.mrb[0].mxu0  ;;  %v226_v21 = vpop.f32.mrb[0].mxu1 }
  0xe0   :  { %v134_v22 = vadd.f32 %v2312_v20, %v2227_v18  ;;  %v128_v23 = vpop.f32.mrb[1].mxu0  ;;  %v2323_v24 = vpop.f32.mrb[1].mxu1 }
  0xe1   :  { %v129_v25 = vadd.f32 %v2227_v18, %v128_v23 }
  0xe2   :  { %v154_v26 = vrot.slane %v134_v22, 6  ;;  %v286_v27 = vrot.slane %v134_v22, 2 }
  0xe3   :  { %v662_v28 = vrot.slane %v129_v25, 6  ;;  %v788_v29 = vrot.slane %v129_v25, 2 }
  0xe4   :  { %v2773_v30 = vsel %vm140_vm2, %v129_v25, %v154_v26  ;;  %v2775_v31 = vsel %vm140_vm2, %v129_v25, %v286_v27 }
  0xe5   :  { %v230_v32 = vadd.f32 %v226_v21, %v2773_v30  ;;  %v2778_v33 = vsel %vm140_vm2, %v134_v22, %v662_v28  ;;  %v2780_v34 = vsel %vm140_vm2, %v134_v22, %v788_v29 }
  0xe7   :  { %v2230_v35 = vmul.f32 -1.442695, %v230_v32 }
  0xe9   :  { %2486 = vpow2.f32 %v2230_v35 }
  0xea   :  { %2488 = vtanh.f32 %v230_v32 }
  0xf3   :  { %v2487_v36 = vpop.eup %2486 }
  0xf4   :  { %v235_v37 = vadd.f32 1.0, %v2487_v36  ;;  %v2489_v39 = vpop.eup %2488 }
  0xf6   :  { %2490 = vrcp.f32 %v235_v37 }
 0x100   :  { %v2491_v40 = vpop.eup %2490 }
 0x101   :  { %v240_v41 = vsel %vm2784_vm5, %v2489_v39, %v2491_v40 }
 0x102   :  { %243 = vrot.lane.b32.xlu0 %v240_v41, %s2639_s2  ;;  %v241_v46 = vmul.f32 0.0, %v240_v41 }
 0x174   :  { %v244_v43 = vpop.permute.xlu0 %243 }
 0x175   :  { %v246_v44 = vmul.f32 %v244_v43, %v240_v41 }
 0x177   :  { %248 = vrot.lane.b32.xlu0 %v246_v44, %s2641_s22 }
 0x17b   :  { %262 = vperm.xlu0 %2485, %v2797_v45  }
 0x1e9   :  { %v249_v47 = vpop.permute.xlu0 %248 }
 0x1ea   :  { %v251_v48 = vadd.f32 %v249_v47, %v241_v46 }
 0x1ec   :  { %2492 = vtanh.f32 %v251_v48 }
 0x1f6   :  { %v2493_v49 = vpop.eup %2492 }
 0x1f7   :  { %254 = vrot.lane.b32.xlu1 %v2493_v49, %s2639_s2 }
 0x1fa   :  { %v2814_v55 = vpop.permute.xlu0 %262 }
 0x1fb   :  { %267 = vperm.xlu1 %2484, %v146_v50  }
 0x269   :  { %v255_v51 = vpop.permute.xlu1 %254 }
 0x26a   :  { %v2804_v52 = vmul.f32 %v255_v51, %v240_v41 }
 0x26c   :  { %274 = vrot.lane.b32.xlu1 %v2804_v52, %s2641_s22 }
 0x270   :  { %279 = vrot.lane.b32.xlu1 %v251_v48, %s2642_s27 }
 0x27a   :  { %v2809_v53 = vpop.permute.xlu1 %267 }
 0x27b   :  { %v2812_v54 = vrot.slane %v2809_v53, 6  ;;  %v2844_v21 = vrot.slane %v2809_v53, 2 }
 0x27d   :  { %v2821_v56 = vsel %vm144_vm6, %v2814_v55, %v2812_v54  ;;  %v2852_v24 = vsel %vm144_vm6, %v2814_v55, %v2844_v21 }
 0x27e   :  { %vm272_vm7 = vcmp.gt.f32.partialorder %v2821_v56, 0.0  ;;  %vm399_vm8 = vcmp.gt.f32.partialorder %v2852_v24, 0.0 }
 0x2de   :  { %v275_v57 = vpop.permute.xlu1 %274 }
 0x2df   :  { %v277_v58 = vsel %vm272_vm7, %v275_v57, 0.0 }
 0x2e0   :  { %2333 = vmatmul.mubr.msk.f32.vlgmr.msra.gmra.mrb[2].mxu0 %vm55_vm0, %v277_v58  ;;  %v404_v28 = vrot.slane %v277_v58, 6 }
 0x2e1   :  { %2440 = vmatpush3.bf16.msra.mxu0 %v2728_v9  ;;  %2354 = vmatprep.mubr.msk.f32.mxu0 %vm2637_vm1, %v2638_v12 }
 0x2e2   :  { %v280_v59 = vpop.permute.xlu1 %279  ;;  %2441 = vmatprep.subr.bf16.mxu0 %v2636_v5 }
 0x2e3   :  { %v282_v60 = vsel %vm272_vm7, %v280_v59, 0.0 }
 0x2e4   :  { %v375_v61 = vrot.slane %v282_v60, 6 }
 0x2e5   :  { %2443 = vmatpush3.bf16.msra.mxu0 %v2743_v14 }
 0x2e6   :  { %376 = vrot.lane.b32.xlu1 %v375_v61, %s2641_s22  ;;  %2450 = vmatprep.subr.bf16.mxu0 %v2636_v5 }
 0x358   :  { %v377_v13 = vpop.permute.xlu1 %376 }
 0x3b3   :  { %v358_v62 = vpop.f32.mrb[2].mxu0 }
 0x3b4   :  { %v363_v63 = vrot.slane %v358_v62, 6  ;;  %v2334_v0 = vpop.f32.mrb[3].mxu0 }
 0x3b6   :  { %v365_v1 = vadd.f32 %v363_v63, %v2775_v31 }
 0x3b8   :  { %v2232_v2 = vmul.f32 -1.442695, %v365_v1 }
 0x3ba   :  { %2494 = vpow2.f32 %v2232_v2 }
 0x3bb   :  { %2496 = vtanh.f32 %v365_v1 }
 0x3c4   :  { %v2495_v3 = vpop.eup %2494 }
 0x3c5   :  { %v370_v4 = vadd.f32 1.0, %v2495_v3  ;;  %v2497_v6 = vpop.eup %2496 }
 0x3c7   :  { %2498 = vrcp.f32 %v370_v4 }
 0x3d1   :  { %v2499_v7 = vpop.eup %2498 }
 0x3d2   :  { %v373_v8 = vsel %vm2784_vm5, %v2497_v6, %v2499_v7 }
 0x3d3   :  { %381 = vrot.lane.b32.xlu0 %v373_v8, %s2639_s2  ;;  %v379_v15 = vmul.f32 %v377_v13, %v373_v8 }
 0x445   :  { %v382_v10 = vpop.permute.xlu0 %381 }
 0x446   :  { %v384_v11 = vmul.f32 %v382_v10, %v373_v8 }
 0x448   :  { %386 = vrot.lane.b32.xlu0 %v384_v11, %s2641_s22 }
 0x4ba   :  { %v387_v18 = vpop.permute.xlu0 %386 }
 0x4bb   :  { %v389_v19 = vadd.f32 %v387_v18, %v379_v15 }
 0x4bd   :  { %2500 = vtanh.f32 %v389_v19 }
 0x4c7   :  { %v2501_v20 = vpop.eup %2500 }
 0x4c8   :  { %392 = vrot.lane.b32.xlu1 %v2501_v20, %s2639_s2 }
 0x4cc   :  { %408 = vrot.lane.b32.xlu1 %v389_v19, %s2642_s27 }
 0x53a   :  { %v393_v22 = vpop.permute.xlu1 %392 }
 0x53b   :  { %v2846_v23 = vmul.f32 %v393_v22, %v373_v8 }
 0x53d   :  { %401 = vrot.lane.b32.xlu0 %v2846_v23, %s2641_s22 }
 0x53e   :  { %v409_v25 = vpop.permute.xlu1 %408 }
 0x53f   :  { %v412_v26 = vsel %vm399_vm8, %v409_v25, %v375_v61 }
 0x540   :  { %v502_v27 = vrot.slane %v412_v26, 6 }
 0x542   :  { %503 = vrot.lane.b32.xlu1 %v502_v27, %s2641_s22 }
 0x5af   :  { %v402_v29 = vpop.permute.xlu0 %401 }
 0x5b0   :  { %v406_v32 = vsel %vm399_vm8, %v402_v29, %v404_v28 }
 0x5b1   :  { %v416_v35 = vrot.slane %v406_v32, 2  ;;  %v527_v1 = vrot.slane %v406_v32, 6 }
 0x5b3   :  { %2344 = vmatmul.mubr.msk.f32.vlgmr.msra.gmra.mrb[2].mxu1 %vm55_vm0, %v416_v35 }
 0x5b4   :  { %2446 = vmatpush3.bf16.msra.mxu1 %v2728_v9  ;;  %2365 = vmatprep.mubr.msk.f32.mxu1 %vm2637_vm1, %v2638_v12  ;;  %v504_v51 = vpop.permute.xlu1 %503 }
 0x5b5   :  { %2447 = vmatprep.subr.bf16.mxu1 %v2636_v5 }
 0x5b8   :  { %2449 = vmatpush3.bf16.msra.mxu1 %v2743_v14 }
 0x5b9   :  { %2456 = vmatprep.subr.bf16.mxu1 %v2636_v5 }
 0x686   :  { %v485_v36 = vpop.f32.mrb[2].mxu1 }
 0x687   :  { %v490_v37 = vrot.slane %v485_v36, 4  ;;  %v2345_v39 = vpop.f32.mrb[3].mxu1 }
 0x689   :  { %v492_v40 = vadd.f32 %v490_v37, %v2773_v30 }
 0x68b   :  { %v2234_v41 = vmul.f32 -1.442695, %v492_v40 }
 0x68d   :  { %2502 = vpow2.f32 %v2234_v41 }
 0x68e   :  { %2504 = vtanh.f32 %v492_v40 }
 0x697   :  { %v2503_v43 = vpop.eup %2502 }
 0x698   :  { %v497_v44 = vadd.f32 1.0, %v2503_v43  ;;  %v2505_v46 = vpop.eup %2504 }
 0x69a   :  { %2506 = vrcp.f32 %v497_v44 }
 0x6a4   :  { %v2507_v47 = vpop.eup %2506 }
 0x6a5   :  { %v500_v48 = vsel %vm2784_vm5, %v2505_v46, %v2507_v47 }
 0x6a6   :  { %508 = vrot.lane.b32.xlu0 %v500_v48, %s2639_s2  ;;  %v506_v57 = vmul.f32 %v504_v51, %v500_v48 }
 0x718   :  { %v509_v49 = vpop.permute.xlu0 %508 }
 0x719   :  { %v511_v50 = vmul.f32 %v509_v49, %v500_v48 }
 0x71b   :  { %513 = vrot.lane.b32.xlu0 %v511_v50, %s2641_s22 }
 0x78d   :  { %v514_v30 = vpop.permute.xlu0 %513 }
 0x78e   :  { %v516_v58 = vadd.f32 %v514_v30, %v506_v57 }
 0x790   :  { %2508 = vtanh.f32 %v516_v58 }
 0x79a   :  { %v2509_v59 = vpop.eup %2508 }
 0x79b   :  { %519 = vrot.lane.b32.xlu1 %v2509_v59, %s2639_s2 }
 0x79f   :  { %531 = vrot.lane.b32.xlu1 %v516_v58, %s2642_s27 }
 0x80d   :  { %v520_v60 = vpop.permute.xlu1 %519 }
 0x80e   :  { %v2876_v61 = vmul.f32 %v520_v60, %v500_v48 }
 0x810   :  { %524 = vrot.lane.b32.xlu0 %v2876_v61, %s2641_s22  ;;  %v536_v38 = vmul.f32 %v2876_v61, %v2814_v55 }
 0x811   :  { %v532_v62 = vpop.permute.xlu1 %531 }
 0x812   :  { %v535_v63 = vsel %vm272_vm7, %v532_v62, %v502_v27 }
 0x813   :  { %v625_v0 = vrot.slane %v535_v63, 6 }
 0x815   :  { %626 = vrot.lane.b32.xlu1 %v625_v0, %s2641_s22 }
 0x882   :  { %v525_v2 = vpop.permute.xlu0 %524 }
 0x883   :  { %v529_v3 = vsel %vm272_vm7, %v525_v2, %v527_v1  ;;  %v2922_v1 = vrot.slane %v2814_v55, 6 }
 0x884   :  { %v539_v4 = vrot.slane %v529_v3, 4  ;;  %v650_v39 = vrot.slane %v529_v3, 6 }
 0x886   :  { %2355 = vmatmul.mubr.msk.f32.vlgmr.msra.gmra.mrb[4].mxu0 %vm55_vm0, %v539_v4  ;;  %v2930_v4 = vsel %vm144_vm6, %v2809_v53, %v2922_v1 }
 0x887   :  { %2452 = vmatpush3.bf16.msra.mxu0 %v2728_v9  ;;  %2376 = vmatprep.mubr.msk.f32.mxu0 %vm2637_vm1, %v2638_v12  ;;  %v627_v25 = vpop.permute.xlu1 %626  ;;  %vm773_vm9 = vcmp.gt.f32.partialorder %v2930_v4, 0.0 }
 0x888   :  { %2453 = vmatprep.subr.bf16.mxu0 %v2636_v5 }
 0x88b   :  { %2455 = vmatpush3.bf16.msra.mxu0 %v2743_v14 }
 0x88c   :  { %2462 = vmatprep.subr.bf16.mxu0 %v2636_v5 }
 0x959   :  { %v608_v6 = vpop.f32.mrb[4].mxu0 }
 0x95a   :  { %v613_v7 = vrot.slane %v608_v6, 2  ;;  %v2356_v8 = vpop.f32.mrb[5].mxu0 }
 0x95c   :  { %v615_v56 = vadd.f32 %v613_v7, %v2775_v31 }
 0x95e   :  { %v2236_v10 = vmul.f32 -1.442695, %v615_v56 }
 0x960   :  { %2510 = vpow2.f32 %v2236_v10 }
 0x961   :  { %2512 = vtanh.f32 %v615_v56 }
 0x96a   :  { %v2511_v11 = vpop.eup %2510 }
 0x96b   :  { %v620_v13 = vadd.f32 1.0, %v2511_v11  ;;  %v2513_v15 = vpop.eup %2512 }
 0x96d   :  { %2514 = vrcp.f32 %v620_v13 }
 0x977   :  { %v2515_v18 = vpop.eup %2514 }
 0x978   :  { %v623_v19 = vsel %vm2784_vm5, %v2513_v15, %v2515_v18 }
 0x979   :  { %631 = vrot.lane.b32.xlu0 %v623_v19, %s2639_s2  ;;  %v629_v26 = vmul.f32 %v627_v25, %v623_v19 }
 0x9eb   :  { %v632_v20 = vpop.permute.xlu0 %631 }
 0x9ec   :  { %v634_v22 = vmul.f32 %v632_v20, %v623_v19 }
 0x9ee   :  { %636 = vrot.lane.b32.xlu0 %v634_v22, %s2641_s22 }
 0xa60   :  { %v637_v31 = vpop.permute.xlu0 %636 }
 0xa61   :  { %v639_v27 = vadd.f32 %v637_v31, %v629_v26 }
 0xa63   :  { %2516 = vtanh.f32 %v639_v27 }
 0xa6d   :  { %v2517_v28 = vpop.eup %2516 }
 0xa6e   :  { %642 = vrot.lane.b32.xlu1 %v2517_v28, %s2639_s2 }
 0xa72   :  { %654 = vrot.lane.b32.xlu1 %v639_v27, %s2642_s27 }
 0xae0   :  { %v643_v29 = vpop.permute.xlu1 %642 }
 0xae1   :  { %v2899_v32 = vmul.f32 %v643_v29, %v623_v19 }
 0xae3   :  { %647 = vrot.lane.b32.xlu0 %v2899_v32, %s2641_s22 }
 0xae4   :  { %v655_v35 = vpop.permute.xlu1 %654 }
 0xae5   :  { %v658_v36 = vsel %vm399_vm8, %v655_v35, %v625_v0  ;;  %v2954_v35 = vrot.slane %v2814_v55, 2 }
 0xae6   :  { %v749_v37 = vrot.slane %v658_v36, 6 }
 0xae8   :  { %750 = vrot.lane.b32.xlu1 %v749_v37, %s2641_s22 }
 0xb55   :  { %v648_v40 = vpop.permute.xlu0 %647 }
 0xb56   :  { %v652_v41 = vsel %vm399_vm8, %v648_v40, %v650_v39  ;;  %v900_v39 = vsel %vm144_vm6, %v2809_v53, %v2954_v35  ;;  %vm1779_vm6 = vcmask 1041409   ;;  %vm1345_vm8 = vcmask 58368  }
 0xb57   :  { %v666_v43 = vrot.slane %v652_v41, 6  ;;  %vm901_vm10 = vcmp.gt.f32.partialorder %v900_v39, 0.0 }
 0xb59   :  { %2366 = vmatmul.mubr.msk.f32.vlgmr.msra.gmra.mrb[4].mxu1 %vm55_vm0, %v666_v43 }
 0xb5a   :  { %2458 = vmatpush3.bf16.msra.mxu1 %v2728_v9  ;;  %2387 = vmatprep.mubr.msk.f32.mxu1 %vm2637_vm1, %v2638_v12  ;;  %v751_v59 = vpop.permute.xlu1 %750 }
 0xb5b   :  { %2459 = vmatprep.subr.bf16.mxu1 %v2636_v5 }
 0xb5e   :  { %2461 = vmatpush3.bf16.msra.mxu1 %v2743_v14 }
 0xc2c   :  { %v735_v44 = vpop.f32.mrb[4].mxu1 }
 0xc2d   :  { %v739_v46 = vadd.f32 %v735_v44, %v2778_v33  ;;  %v2367_v47 = vpop.f32.mrb[5].mxu1 }
 0xc2f   :  { %v2238_v48 = vmul.f32 -1.442695, %v739_v46 }
 0xc31   :  { %2518 = vpow2.f32 %v2238_v48 }
 0xc32   :  { %2520 = vtanh.f32 %v739_v46 }
 0xc3b   :  { %v2519_v24 = vpop.eup %2518 }
 0xc3c   :  { %v744_v49 = vadd.f32 1.0, %v2519_v24  ;;  %v2521_v50 = vpop.eup %2520 }
 0xc3e   :  { %2522 = vrcp.f32 %v744_v49 }
 0xc48   :  { %v2523_v51 = vpop.eup %2522 }
 0xc49   :  { %v747_v57 = vsel %vm2784_vm5, %v2521_v50, %v2523_v51 }
 0xc4a   :  { %755 = vrot.lane.b32.xlu0 %v747_v57, %s2639_s2  ;;  %v753_v60 = vmul.f32 %v751_v59, %v747_v57 }
 0xcbc   :  { %v756_v30 = vpop.permute.xlu0 %755 }
 0xcbd   :  { %v758_v58 = vmul.f32 %v756_v30, %v747_v57 }
 0xcbf   :  { %760 = vrot.lane.b32.xlu0 %v758_v58, %s2641_s22 }
 0xd31   :  { %v761_v62 = vpop.permute.xlu0 %760 }
 0xd32   :  { %v763_v63 = vadd.f32 %v761_v62, %v753_v60 }
 0xd34   :  { %2524 = vtanh.f32 %v763_v63 }
 0xd3e   :  { %v2525_v0 = vpop.eup %2524 }
 0xd3f   :  { %766 = vrot.lane.b32.xlu1 %v2525_v0, %s2639_s2 }
 0xd43   :  { %781 = vrot.lane.b32.xlu1 %v763_v63, %s2642_s27 }
 0xdb1   :  { %v767_v2 = vpop.permute.xlu1 %766 }
 0xdb2   :  { %v2924_v3 = vmul.f32 %v767_v2, %v747_v57 }
 0xdb4   :  { %775 = vrot.lane.b32.xlu0 %v2924_v3, %s2641_s22  ;;  %v786_v39 = vmul.f32 %v2924_v3, %v2809_v53 }
 0xdb5   :  { %v782_v6 = vpop.permute.xlu1 %781 }
 0xdb6   :  { %v785_v7 = vsel %vm773_vm9, %v782_v6, %v749_v37 }
 0xdb7   :  { %v877_v8 = vrot.slane %v785_v7, 6 }
 0xdb9   :  { %878 = vrot.lane.b32.xlu1 %v877_v8, %s2641_s22 }
 0xe26   :  { %v776_v56 = vpop.permute.xlu0 %775 }
 0xe27   :  { %v779_v10 = vsel %vm773_vm9, %v776_v56, %v666_v43 }
 0xe28   :  { %2377 = vmatmul.mubr.msk.f32.vlgmr.msra.gmra.mrb[6].mxu0 %vm55_vm0, %v779_v10  ;;  %v906_v44 = vrot.slane %v779_v10, 6 }
 0xe29   :  { %2464 = vmatpush3.bf16.msra.mxu0 %v2728_v9  ;;  %2398 = vmatprep.mubr.msk.f32.mxu0 %vm2637_vm1, %v2638_v12  ;;  %vm1423_vm1 = vcmask 1043459  }
 0xe2a   :  { %2465 = vmatprep.subr.bf16.mxu0 %v2636_v5 }
 0xe2b   :  { %v879_v26 = vpop.permute.xlu1 %878 }
 0xe2d   :  { %2467 = vmatpush3.bf16.msra.mxu0 %v2743_v14 }
 0xefb   :  { %v860_v11 = vpop.f32.mrb[6].mxu0 }
 0xefc   :  { %v865_v13 = vrot.slane %v860_v11, 6  ;;  %v2378_v15 = vpop.f32.mrb[7].mxu0 }
 0xefe   :  { %v867_v18 = vadd.f32 %v865_v13, %v2780_v34 }
 0xf00   :  { %v2240_v19 = vmul.f32 -1.442695, %v867_v18 }
 0xf02   :  { %2526 = vpow2.f32 %v2240_v19 }
 0xf03   :  { %2528 = vtanh.f32 %v867_v18 }
 0xf0c   :  { %v2527_v20 = vpop.eup %2526 }
 0xf0d   :  { %v872_v22 = vadd.f32 1.0, %v2527_v20  ;;  %v2529_v25 = vpop.eup %2528 }
 0xf0f   :  { %2530 = vrcp.f32 %v872_v22 }
 0xf19   :  { %v2531_v9 = vpop.eup %2530 }
 0xf1a   :  { %v875_v12 = vsel %vm2784_vm5, %v2529_v25, %v2531_v9 }
 0xf1b   :  { %883 = vrot.lane.b32.xlu0 %v875_v12, %s2639_s2  ;;  %v881_v31 = vmul.f32 %v879_v26, %v875_v12 }
 0xf8d   :  { %v884_v5 = vpop.permute.xlu0 %883 }
 0xf8e   :  { %v886_v14 = vmul.f32 %v884_v5, %v875_v12 }
 0xf90   :  { %888 = vrot.lane.b32.xlu0 %v886_v14, %s2641_s22 }
0x1002   :  { %v889_v27 = vpop.permute.xlu0 %888 }
0x1003   :  { %v891_v28 = vadd.f32 %v889_v27, %v881_v31 }
0x1005   :  { %2532 = vtanh.f32 %v891_v28 }
0x100f   :  { %v2533_v29 = vpop.eup %2532 }
0x1010   :  { %894 = vrot.lane.b32.xlu1 %v2533_v29, %s2639_s2 }
0x1014   :  { %910 = vrot.lane.b32.xlu1 %v891_v28, %s2642_s27 }
0x1082   :  { %v895_v36 = vpop.permute.xlu1 %894 }
0x1083   :  { %v2956_v37 = vmul.f32 %v895_v36, %v875_v12  ;;  %v413_v36 = vmul.f32 %v2846_v23, %v2814_v55 }
0x1085   :  { %903 = vrot.lane.b32.xlu0 %v2956_v37, %s2641_s22 }
0x1086   :  { %v911_v40 = vpop.permute.xlu1 %910 }
0x1087   :  { %v914_v41 = vsel %vm901_vm10, %v911_v40, %v877_v8  ;;  %v915_v40 = vmul.f32 %v2956_v37, %v2809_v53 }
0x1088   :  { %v1004_v43 = vrot.slane %v914_v41, 6  ;;  %v659_v41 = vmul.f32 %v2899_v32, %v2814_v55 }
0x108a   :  { %1005 = vrot.lane.b32.xlu1 %v1004_v43, %s2641_s22 }
0x10f7   :  { %v904_v46 = vpop.permute.xlu0 %903 }
0x10f8   :  { %v908_v47 = vsel %vm901_vm10, %v904_v46, %v906_v44  ;;  %vm1700_vm10 = vcmask 64518  }
0x10f9   :  { %v918_v48 = vrot.slane %v908_v47, 2  ;;  %v1029_v15 = vrot.slane %v908_v47, 6 }
0x10fb   :  { %2388 = vmatmul.mubr.msk.f32.vlgmr.msra.gmra.mrb[6].mxu1 %vm55_vm0, %v918_v48 }
0x10fc   :  { %v1006_v0 = vpop.permute.xlu1 %1005 }
0x11ce   :  { %v987_v24 = vpop.f32.mrb[6].mxu1 }
0x11cf   :  { %v992_v49 = vrot.slane %v987_v24, 4  ;;  %v2389_v50 = vpop.f32.mrb[7].mxu1 }
0x11d1   :  { %v994_v17 = vadd.f32 %v992_v49, %v2778_v33 }
0x11d3   :  { %v2242_v51 = vmul.f32 -1.442695, %v994_v17 }
0x11d5   :  { %2534 = vpow2.f32 %v2242_v51  ;;  %v660_v51 = vmul.f32 %v2899_v32, %v2844_v21 }
0x11d6   :  { %2536 = vtanh.f32 %v994_v17 }
0x11df   :  { %v2535_v57 = vpop.eup %2534 }
0x11e0   :  { %v999_v30 = vadd.f32 1.0, %v2535_v57  ;;  %v2537_v58 = vpop.eup %2536  ;;  %v1196_v57 = vrot.slane %v660_v51, 6 }
0x11e2   :  { %2538 = vrcp.f32 %v999_v30  ;;  %v537_v30 = vmul.f32 %v2876_v61, %v2812_v54  ;;  %v1240_v61 = vld [vmem:[%s3374_s4] sm:$0xff] }
0x11ec   :  { %v2539_v59 = vpop.eup %2538 }
0x11ed   :  { %v1002_v60 = vsel %vm2784_vm5, %v2537_v58, %v2539_v59  ;;  %v1206_v58 = vrot.slane %v537_v30, 2  ;;  %v787_v59 = vmul.f32 %v2922_v1, %v2924_v3  ;;  %v3083_v30 = vld [vmem:[%s3376_s6] sm:$0xff] }
0x11ee   :  { %1010 = vrot.lane.b32.xlu0 %v1002_v60, %s2639_s2  ;;  %v1008_v2 = vmul.f32 %v1006_v0, %v1002_v60 }
0x1260   :  { %v1011_v62 = vpop.permute.xlu0 %1010 }
0x1261   :  { %v1013_v63 = vmul.f32 %v1011_v62, %v1002_v60  ;;  %v1241_v62 = vld [vmem:[%s3374_s4 + $0x8] sm:$0xff] }
0x1263   :  { %1015 = vrot.lane.b32.xlu0 %v1013_v63, %s2641_s22 }
0x12d5   :  { %v1016_v33 = vpop.permute.xlu0 %1015 }
0x12d6   :  { %v1018_v6 = vadd.f32 %v1016_v33, %v1008_v2 }
0x12d8   :  { %2540 = vtanh.f32 %v1018_v6 }
0x12e2   :  { %v2541_v7 = vpop.eup %2540 }
0x12e3   :  { %1021 = vrot.lane.b32.xlu1 %v2541_v7, %s2639_s2  ;;  %v285_v7 = vmul.f32 %v2812_v54, %v2804_v52 }
0x12e7   :  { %1033 = vrot.lane.b32.xlu1 %v1018_v6, %s2642_s27 }
0x1355   :  { %v1022_v8 = vpop.permute.xlu1 %1021 }
0x1356   :  { %v1024_v56 = vmul.f32 %v1022_v8, %v1002_v60  ;;  %v414_v60 = vmul.f32 %v2844_v21, %v2846_v23  ;;  %v1242_v21 = vld [vmem:[%s3374_s4 + $0x10] sm:$0xff]  ;;  %v1243_v23 = vld [vmem:[%s3374_s4 + $0x18] sm:$0xff]  ;;  %v1226_v8 = vrot.slane %v285_v7, 2 }
0x1357   :  { %v2472_v3 = vpack.c.bf16 %v1243_v23, %v1242_v21 }
0x1358   :  { %1026 = vrot.lane.b32.xlu0 %v1024_v56, %s2641_s22  ;;  %v1039_v24 = vmul.f32 %v1024_v56, %v2922_v1  ;;  %v1216_v32 = vrot.slane %v414_v60, 6  ;;  %v2468_v1 = vpack.c.bf16 %v1241_v62, %v1240_v61 }
0x1359   :  { %v1034_v10 = vpop.permute.xlu1 %1033 }
0x135a   :  { %v1037_v11 = vsel %vm773_vm9, %v1034_v10, %v1004_v43  ;;  %v1038_v43 = vmul.f32 %v1024_v56, %v2809_v53  ;;  %v1166_v50 = vrot.slane %v1039_v24, 2  ;;  %2469 = vmatprep.subr.bf16.mxu1 %v2468_v1  ;;  %v2248_v24 = vld [vmem:[%s3377_s7] ss:$0 sm:$0xff] }
0x135b   :  { %v1127_v13 = vrot.slane %v1037_v11, 6  ;;  %2471 = vmatpush3.bf16.msra.mxu1 %v2468_v1 }
0x135c   :  { %2473 = vmatprep.subr.bf16.mxu1 %v2472_v3 }
0x135d   :  { %1128 = vrot.lane.b32.xlu1 %v1127_v13, %s2641_s22 }
0x135f   :  { %2475 = vmatpush3.bf16.msra.mxu1 %v2472_v3 }
0x13ca   :  { %v1027_v18 = vpop.permute.xlu0 %1026 }
0x13cb   :  { %v1031_v19 = vsel %vm773_vm9, %v1027_v18, %v1029_v15  ;;  %vm1466_vm9 = vcmask 60418  }
0x13cc   :  { %v1041_v20 = vrot.slane %v1031_v19, 4 }
0x13ce   :  { %2399 = vmatmul.mubr.msk.f32.vlgmr.msra.gmra.mrb[8].mxu0 %vm55_vm0, %v1041_v20 }
0x13cf   :  { %v1129_v44 = vpop.permute.xlu1 %1128 }
0x14a1   :  { %v1110_v22 = vpop.f32.mrb[8].mxu0 }
0x14a2   :  { %v1115_v25 = vrot.slane %v1110_v22, 2  ;;  %v2400_v9 = vpop.f32.mrb[9].mxu0 }
0x14a4   :  { %v1117_v12 = vadd.f32 %v1115_v25, %v2780_v34  ;;  %v283_v34 = vmul.f32 %v2814_v55, %v2804_v52  ;;  %v916_v55 = vmul.f32 %v2954_v35, %v2956_v37  ;;  %v1186_v37 = vrot.slane %v787_v59, 2 }
0x14a6   :  { %v2244_v5 = vmul.f32 -1.442695, %v1117_v12  ;;  %v1176_v17 = vrot.slane %v916_v55, 6 }
0x14a8   :  { %2542 = vpow2.f32 %v2244_v5 }
0x14a9   :  { %2544 = vtanh.f32 %v1117_v12 }
0x14b2   :  { %v2543_v14 = vpop.eup %2542 }
0x14b3   :  { %v1122_v26 = vadd.f32 1.0, %v2543_v14  ;;  %v2545_v31 = vpop.eup %2544 }
0x14b5   :  { %2546 = vrcp.f32 %v1122_v26 }
0x14bf   :  { %v2547_v27 = vpop.eup %2546 }
0x14c0   :  { %v1125_v4 = vsel %vm2784_vm5, %v2545_v31, %v2547_v27 }
0x14c1   :  { %1133 = vrot.lane.b32.xlu0 %v1125_v4, %s2639_s2  ;;  %v1131_v46 = vmul.f32 %v1129_v44, %v1125_v4  ;;  %v2245_v44 = vld [vmem:[%s3375_s5] ss:$0 sm:$0xff] }
0x1533   :  { %v1134_v28 = vpop.permute.xlu0 %1133 }
0x1534   :  { %v1136_v29 = vmul.f32 %v1134_v28, %v1125_v4 }
0x1536   :  { %1138 = vrot.lane.b32.xlu0 %v1136_v29, %s2641_s22 }
0x153a   :  { %1151 = vrot.lane.b32.xlu0 %v283_v34, %s2641_s22 }
0x153e   :  { %1162 = vrot.lane.b32.xlu0 %v413_v36, %s2641_s22 }
0x1542   :  { %1172 = vrot.lane.b32.xlu0 %v536_v38, %s2641_s22 }
0x1546   :  { %1192 = vrot.lane.b32.xlu0 %v786_v39, %s2641_s22 }
0x154a   :  { %1202 = vrot.lane.b32.xlu0 %v915_v40, %s2641_s22 }
0x154e   :  { %1182 = vrot.lane.b32.xlu0 %v659_v41, %s2641_s22 }
0x1552   :  { %1212 = vrot.lane.b32.xlu0 %v1038_v43, %s2641_s22  ;;  %v3053_v43 = vshrl.u32 %v137_v16, 7 }
0x1554   :  { %v3069_v16 = vsub.s32 0, %v3053_v43 }
0x15a8   :  { %v1139_v47 = vpop.permute.xlu0 %1138 }
0x15a9   :  { %v1141_v48 = vadd.f32 %v1139_v47, %v1131_v46 }
0x15ab   :  { %2548 = vtanh.f32 %v1141_v48 }
0x15ac   :  { %v1152_v56 = vpop.permute.xlu0 %1151 }
0x15b0   :  { %v1163_v11 = vpop.permute.xlu0 %1162 }
0x15b4   :  { %v1173_v15 = vpop.permute.xlu0 %1172 }
0x15b5   :  { %v2549_v49 = vpop.eup %2548 }
0x15b6   :  { %1144 = vrot.lane.b32.xlu1 %v2549_v49, %s2639_s2 }
0x15ba   :  { %1167 = vrot.lane.b32.xlu1 %v1166_v50, %s2641_s22  ;;  %v3066_v50 = vsub.s32 1, %v3053_v43 }
0x15be   :  { %1177 = vrot.lane.b32.xlu1 %v1176_v17, %s2641_s22 }
0x15c2   :  { %1197 = vrot.lane.b32.xlu1 %v1196_v57, %s2641_s22  ;;  %v1414_v57 = vsel %vm1406_vm15, 1, %v2640_v42 }
0x15c6   :  { %1207 = vrot.lane.b32.xlu1 %v1206_v58, %s2641_s22 }
0x15ca   :  { %1187 = vrot.lane.b32.xlu1 %v1186_v37, %s2641_s22 }
0x15ce   :  { %1217 = vrot.lane.b32.xlu1 %v1216_v32, %s2641_s22 }
0x1628   :  { %v1145_v63 = vpop.permute.xlu1 %1144 }
0x1629   :  { %v1147_v0 = vmul.f32 %v1145_v63, %v1125_v4 }
0x162b   :  { %v1148_v2 = vmul.f32 %v1147_v0, %v2809_v53  ;;  %v1149_v33 = vmul.f32 %v1147_v0, %v2954_v35  ;;  %v1193_v53 = vpop.permute.xlu0 %1192 }
0x162c   :  { %v1168_v10 = vpop.permute.xlu1 %1167 }
0x162d   :  { %v1155_v6 = vrot.slane %v1149_v33, 6  ;;  %1222 = vrot.lane.b32.xlu0 %v1148_v2, %s2641_s22  ;;  %v1170_v54 = vsel %vm1159_vm11, %v1163_v11, %v1168_v10 }
0x162f   :  { %1156 = vrot.lane.b32.xlu1 %v1155_v6, %s2641_s22  ;;  %v1203_v35 = vpop.permute.xlu0 %1202 }
0x1630   :  { %v1178_v13 = vpop.permute.xlu1 %1177 }
0x1631   :  { %v1180_v14 = vsel %vm1159_vm11, %v1173_v15, %v1178_v13 }
0x1633   :  { %1227 = vrot.lane.b32.xlu1 %v1226_v8, %s2641_s22  ;;  %v1183_v22 = vpop.permute.xlu0 %1182 }
0x1634   :  { %v1198_v18 = vpop.permute.xlu1 %1197 }
0x1635   :  { %v1200_v27 = vsel %vm1159_vm11, %v1193_v53, %v1198_v18 }
0x1637   :  { %v1213_v9 = vpop.permute.xlu0 %1212 }
0x1638   :  { %v1208_v19 = vpop.permute.xlu1 %1207 }
0x1639   :  { %v1210_v12 = vsel %vm1159_vm11, %v1203_v35, %v1208_v19 }
0x163a   :  { %v1237_v29 = vsel %vm1231_vm12, %v1200_v27, %v1210_v12 }
0x163c   :  { %v1188_v20 = vpop.permute.xlu1 %1187 }
0x163d   :  { %v1190_v4 = vsel %vm1159_vm11, %v1183_v22, %v1188_v20 }
0x1640   :  { %v1218_v25 = vpop.permute.xlu1 %1217 }
0x1641   :  { %v1220_v26 = vsel %vm1159_vm11, %v1213_v9, %v1218_v25 }
0x1642   :  { %v1238_v39 = vsel %vm1233_vm14, %v1237_v29, %v1220_v26 }
0x169f   :  { %v1223_v34 = vpop.permute.xlu0 %1222 }
0x16a1   :  { %v1157_v52 = vpop.permute.xlu1 %1156 }
0x16a2   :  { %v1160_v5 = vsel %vm1159_vm11, %v1152_v56, %v1157_v52 }
0x16a3   :  { %v1232_v31 = vsel %vm1231_vm12, %v1160_v5, %v1170_v54  ;;  %vm2203_vm12 = vcmask 1024  }
0x16a4   :  { %v1234_v28 = vsel %vm1233_vm14, %v1232_v31, %v1180_v14 }
0x16a5   :  { %v1228_v36 = vpop.permute.xlu1 %1227  ;;  %v1236_v38 = vsel %vm1235_vm13, %v1234_v28, %v1190_v4 }
0x16a6   :  { %v1230_v40 = vsel %vm1159_vm11, %v1223_v34, %v1228_v36  ;;  %2409 = vmatprep.mubr.msk.f32.mxu1 %vm55_vm0, %v1236_v38  ;;  %vm1583_vm11 = vcmask 62468  }
0x16a7   :  { %v1239_v41 = vsel %vm1235_vm13, %v1238_v39, %v1230_v40  ;;  %vm2211_vm13 = vcmask 0  }
0x16a8   :  { %2410 = vmatmul.mubr.msk.f32.vlgmr.msra.gmra.mrb[8].mxu1 %vm55_vm0, %v1239_v41  ;;  %vm1365_vm0 = vcmask 64512  }
0x177b   :  { %v2411_v46 = vpop.f32.mrb[8].mxu1 }
0x177c   :  { %v3058_v47 = vadd.f32 %v2411_v46, %v2245_v44  ;;  %v1323_v48 = vpop.f32.mrb[9].mxu1 }
0x177d   :  { %v3063_v49 = vadd.f32 %v2245_v44, %v1323_v48  ;;  %v3096_v48 = vsub.s32 3, %v3053_v43 }
0x177f   :  { %v3072_v55 = vadd.f32 %v2248_v24, %v3063_v49  ;;  %v1409_v29 = vrot.slane %v3063_v49, 3  ;;  %v1408_v36 = vrot.slane %v3063_v49, 2  ;;  %v3099_v24 = vsub.s32 2, %v3053_v43 }
0x1781   :  { %v1359_v17 = vrot.slane %v3072_v55, %v3066_v50  ;;  %v1352_v51 = vrot.slane %v3072_v55, %v3069_v16 }
0x1783   :  { %1361 = vbcast.lane.b32.xlu1 %v1359_v17, 256  ;;  %1354 = vbcast.lane.b32.xlu0 %v1352_v51, 256  ;;  %v1427_v17 = vrot.slane %v3072_v55, 6 }
0x1787   :  { %1416 = vperm.xlu0 %2485, %v1414_v57  }
0x17f5   :  { %v1362_v58 = vpop.permute.xlu1 %1361  ;;  %v1355_v59 = vpop.permute.xlu0 %1354 }
0x17f6   :  { %v1364_v37 = vadd.f32 %v1362_v58, %v3083_v30  ;;  %v1363_v60 = vadd.f32 %v1355_v59, %v3083_v30 }
0x17f8   :  { %v1373_v32 = vsel %vm1365_vm0, %v1364_v37, -inf  ;;  %v1366_v45 = vsel %vm1365_vm0, %v1363_v60, -inf }
0x17f9   :  { %v1374_v61 = vrot.slane %v1373_v32, 4  ;;  %v1367_v62 = vrot.slane %v1366_v45, 4 }
0x17fb   :  { %v1375_v1 = vmax.f32 %v1373_v32, %v1374_v61  ;;  %v1368_v21 = vmax.f32 %v1366_v45, %v1367_v62 }
0x17fd   :  { %v1376_v23 = vrot.slane %v1375_v1, 2  ;;  %v1369_v3 = vrot.slane %v1368_v21, 2 }
0x17ff   :  { %v1377_v63 = vmax.f32 %v1375_v1, %v1376_v23  ;;  %v1370_v0 = vmax.f32 %v1368_v21, %v1369_v3 }
0x1801   :  { %v1378_v2 = vrot.slane %v1377_v63, 1  ;;  %v1371_v33 = vrot.slane %v1370_v0, 1 }
0x1803   :  { %v1379_v6 = vmax.f32 %v1377_v63, %v1378_v2  ;;  %v1372_v7 = vmax.f32 %v1370_v0, %v1371_v33 }
0x1805   :  { %v1381_v8 = vsub.f32 %v1364_v37, %v1379_v6  ;;  %v1380_v56 = vsub.f32 %v1363_v60, %v1372_v7 }
0x1806   :  { %v3093_v44 = vpop.permute.xlu0 %1416 }
0x1807   :  { %v1384_v10 = vmul.f32 1.442695, %v1381_v8  ;;  %v1382_v11 = vmul.f32 1.442695, %v1380_v56  ;;  %vm1418_vm2 = vcmp.eq.s32.totalorder %v3093_v44, 1 }
0x1809   :  { %2550 = vpow2.f32 %v1384_v10 }
0x180a   :  { %2552 = vpow2.f32 %v1382_v11 }
0x1813   :  { %v2551_v13 = vpop.eup %2550 }
0x1814   :  { %v2553_v15 = vpop.eup %2552  ;;  %v1393_v18 = vsel %vm1365_vm0, %v2551_v13, 0.0 }
0x1815   :  { %v1394_v53 = vrot.slane %v1393_v18, 4  ;;  %v1386_v19 = vsel %vm1365_vm0, %v2553_v15, 0.0 }
0x1816   :  { %v1387_v35 = vrot.slane %v1386_v19, 4 }
0x1817   :  { %v1395_v20 = vadd.f32 %v1394_v53, %v1393_v18 }
0x1818   :  { %v1388_v22 = vadd.f32 %v1387_v35, %v1386_v19 }
0x1819   :  { %v1396_v25 = vrot.slane %v1395_v20, 2 }
0x181a   :  { %v1389_v9 = vrot.slane %v1388_v22, 2 }
0x181b   :  { %v1397_v52 = vadd.f32 %v1396_v25, %v1395_v20 }
0x181c   :  { %v1390_v54 = vadd.f32 %v1389_v9, %v1388_v22 }
0x181d   :  { %v1398_v12 = vrot.slane %v1397_v52, 1 }
0x181e   :  { %v1391_v5 = vrot.slane %v1390_v54, 1 }
0x181f   :  { %v1399_v14 = vadd.f32 %v1398_v12, %v1397_v52 }
0x1820   :  { %v1392_v26 = vadd.f32 %v1391_v5, %v1390_v54 }
0x1821   :  { %2554 = vlog2.f32 %v1399_v14 }
0x1822   :  { %2556 = vlog2.f32 %v1392_v26 }
0x182b   :  { %v2555_v31 = vpop.eup %2554 }
0x182c   :  { %v2557_v27 = vpop.eup %2556  ;;  %v1403_v4 = vmul.f32 0.6931472, %v2555_v31 }
0x182d   :  { %v1401_v28 = vmul.f32 0.6931472, %v2557_v27 }
0x182e   :  { %v1405_v34 = vadd.f32 %v1403_v4, %v1379_v6 }
0x182f   :  { %v1404_v38 = vadd.f32 %v1401_v28, %v1372_v7 }
0x1830   :  { %v1413_v39 = vadd.f32 %v1409_v29, %v1405_v34 }
0x1831   :  { %v1412_v40 = vadd.f32 %v1408_v36, %v1404_v38  ;;  %v1531_v36 = vrot.slane %v3063_v49, 5 }
0x1832   :  { %v1422_v41 = vrot.slane %v1413_v39, 5  ;;  %v1530_v39 = vrot.slane %v3063_v49, 4 }
0x1833   :  { %v1421_v46 = vrot.slane %v1412_v40, 6 }
0x1835   :  { %v1424_v51 = vsel %vm1423_vm1, %v1422_v41, %v1421_v46 }
0x1836   :  { %v3106_v57 = vsel %vm1418_vm2, %v1424_v51, %v1427_v17 }
0x1837   :  { %v1484_v58 = vrot.slane %v3106_v57, %v3096_v48  ;;  %v1477_v59 = vrot.slane %v3106_v57, %v3099_v24 }
0x1839   :  { %1486 = vbcast.lane.b32.xlu0 %v1484_v58, 256  ;;  %1479 = vbcast.lane.b32.xlu1 %v1477_v59, 256  ;;  %v3121_v58 = vsub.s32 5, %v3053_v43  ;;  %v3124_v59 = vsub.s32 4, %v3053_v43 }
0x18ab   :  { %v1487_v37 = vpop.permute.xlu0 %1486  ;;  %v1480_v60 = vpop.permute.xlu1 %1479 }
0x18ac   :  { %v1489_v32 = vadd.f32 %v1487_v37, %v3083_v30  ;;  %v1488_v45 = vadd.f32 %v1480_v60, %v3083_v30  ;;  %v1544_v37 = vrot.slane %v3106_v57, 6 }
0x18ae   :  { %v1497_v61 = vsel %vm1365_vm0, %v1489_v32, -inf  ;;  %v1490_v62 = vsel %vm1365_vm0, %v1488_v45, -inf }
0x18af   :  { %v1498_v1 = vrot.slane %v1497_v61, 4  ;;  %v1491_v21 = vrot.slane %v1490_v62, 4 }
0x18b1   :  { %v1499_v23 = vmax.f32 %v1497_v61, %v1498_v1  ;;  %v1492_v3 = vmax.f32 %v1490_v62, %v1491_v21 }
0x18b3   :  { %v1500_v63 = vrot.slane %v1499_v23, 2  ;;  %v1493_v0 = vrot.slane %v1492_v3, 2 }
0x18b5   :  { %v1501_v2 = vmax.f32 %v1499_v23, %v1500_v63  ;;  %v1494_v33 = vmax.f32 %v1492_v3, %v1493_v0 }
0x18b7   :  { %v1502_v6 = vrot.slane %v1501_v2, 1  ;;  %v1495_v7 = vrot.slane %v1494_v33, 1 }
0x18b9   :  { %v1503_v8 = vmax.f32 %v1501_v2, %v1502_v6  ;;  %v1496_v56 = vmax.f32 %v1494_v33, %v1495_v7 }
0x18bb   :  { %v1505_v10 = vsub.f32 %v1489_v32, %v1503_v8  ;;  %v1504_v11 = vsub.f32 %v1488_v45, %v1496_v56 }
0x18bd   :  { %v1508_v13 = vmul.f32 1.442695, %v1505_v10  ;;  %v1506_v15 = vmul.f32 1.442695, %v1504_v11 }
0x18bf   :  { %2558 = vpow2.f32 %v1508_v13 }
0x18c0   :  { %2560 = vpow2.f32 %v1506_v15 }
0x18c9   :  { %v2559_v18 = vpop.eup %2558 }
0x18ca   :  { %v2561_v53 = vpop.eup %2560  ;;  %v1517_v19 = vsel %vm1365_vm0, %v2559_v18, 0.0 }
0x18cb   :  { %v1518_v35 = vrot.slane %v1517_v19, 4  ;;  %v1510_v20 = vsel %vm1365_vm0, %v2561_v53, 0.0 }
0x18cc   :  { %v1511_v22 = vrot.slane %v1510_v20, 4 }
0x18cd   :  { %v1519_v25 = vadd.f32 %v1518_v35, %v1517_v19 }
0x18ce   :  { %v1512_v9 = vadd.f32 %v1511_v22, %v1510_v20 }
0x18cf   :  { %v1520_v52 = vrot.slane %v1519_v25, 2 }
0x18d0   :  { %v1513_v54 = vrot.slane %v1512_v9, 2 }
0x18d1   :  { %v1521_v12 = vadd.f32 %v1520_v52, %v1519_v25 }
0x18d2   :  { %v1514_v5 = vadd.f32 %v1513_v54, %v1512_v9 }
0x18d3   :  { %v1522_v14 = vrot.slane %v1521_v12, 1 }
0x18d4   :  { %v1515_v26 = vrot.slane %v1514_v5, 1 }
0x18d5   :  { %v1523_v31 = vadd.f32 %v1522_v14, %v1521_v12 }
0x18d6   :  { %v1516_v27 = vadd.f32 %v1515_v26, %v1514_v5 }
0x18d7   :  { %2562 = vlog2.f32 %v1523_v31 }
0x18d8   :  { %2564 = vlog2.f32 %v1516_v27 }
0x18e1   :  { %v2563_v4 = vpop.eup %2562 }
0x18e2   :  { %v2565_v28 = vpop.eup %2564  ;;  %v1527_v29 = vmul.f32 0.6931472, %v2563_v4 }
0x18e3   :  { %v1525_v34 = vmul.f32 0.6931472, %v2565_v28 }
0x18e4   :  { %v1529_v38 = vadd.f32 %v1527_v29, %v1503_v8 }
0x18e5   :  { %v1528_v40 = vadd.f32 %v1525_v34, %v1496_v56 }
0x18e6   :  { %v1535_v41 = vadd.f32 %v1531_v36, %v1529_v38 }
0x18e7   :  { %v1534_v46 = vadd.f32 %v1530_v39, %v1528_v40 }
0x18e8   :  { %v1539_v17 = vrot.slane %v1535_v41, 3  ;;  %v1648_v41 = vrot.slane %v3063_v49, 7 }
0x18e9   :  { %v1538_v51 = vrot.slane %v1534_v46, 4 }
0x18eb   :  { %v1541_v60 = vsel %vm1540_vm3, %v1539_v17, %v1538_v51  ;;  %v1647_v17 = vrot.slane %v3063_v49, 6 }
0x18ec   :  { %v3130_v32 = vsel %vm1418_vm2, %v1541_v60, %v1544_v37 }
0x18ed   :  { %v1601_v45 = vrot.slane %v3130_v32, %v3121_v58  ;;  %v1594_v61 = vrot.slane %v3130_v32, %v3124_v59 }
0x18ef   :  { %1603 = vbcast.lane.b32.xlu0 %v1601_v45, 256  ;;  %1596 = vbcast.lane.b32.xlu1 %v1594_v61, 256 }
0x1961   :  { %v1604_v62 = vpop.permute.xlu0 %1603  ;;  %v1597_v1 = vpop.permute.xlu1 %1596 }
0x1962   :  { %v1606_v21 = vadd.f32 %v1604_v62, %v3083_v30  ;;  %v1605_v57 = vadd.f32 %v1597_v1, %v3083_v30  ;;  %v1717_v62 = vsub.s32 7, %v3053_v43  ;;  %v1710_v1 = vsub.s32 6, %v3053_v43 }
0x1964   :  { %v1614_v23 = vsel %vm1365_vm0, %v1606_v21, -inf  ;;  %v1607_v3 = vsel %vm1365_vm0, %v1605_v57, -inf }
0x1965   :  { %v1615_v63 = vrot.slane %v1614_v23, 4  ;;  %v1608_v0 = vrot.slane %v1607_v3, 4 }
0x1967   :  { %v1616_v2 = vmax.f32 %v1614_v23, %v1615_v63  ;;  %v1609_v33 = vmax.f32 %v1607_v3, %v1608_v0  ;;  %v2610_v0 = vld [vmem:[%s3380_s10 + $0x8] sm:$0xff] }
0x1968   :  { %vm1764_vm5 = vcmp.gt.f32.partialorder %v2610_v0, 0.0 }
0x1969   :  { %v1617_v6 = vrot.slane %v1616_v2, 2  ;;  %v1610_v7 = vrot.slane %v1609_v33, 2 }
0x196b   :  { %v1618_v8 = vmax.f32 %v1616_v2, %v1617_v6  ;;  %v1611_v56 = vmax.f32 %v1609_v33, %v1610_v7 }
0x196d   :  { %v1619_v10 = vrot.slane %v1618_v8, 1  ;;  %v1612_v11 = vrot.slane %v1611_v56, 1 }
0x196f   :  { %v1620_v13 = vmax.f32 %v1618_v8, %v1619_v10  ;;  %v1613_v15 = vmax.f32 %v1611_v56, %v1612_v11 }
0x1971   :  { %v1622_v18 = vsub.f32 %v1606_v21, %v1620_v13  ;;  %v1621_v53 = vsub.f32 %v1605_v57, %v1613_v15  ;;  %v1661_v21 = vrot.slane %v3130_v32, 6  ;;  %v1771_v32 = vsel %vm1764_vm5, 1, %v2640_v42 }
0x1973   :  { %v1625_v19 = vmul.f32 1.442695, %v1622_v18  ;;  %v1623_v35 = vmul.f32 1.442695, %v1621_v53 }
0x1975   :  { %2566 = vpow2.f32 %v1625_v19 }
0x1976   :  { %2568 = vpow2.f32 %v1623_v35 }
0x197f   :  { %v2567_v20 = vpop.eup %2566 }
0x1980   :  { %v2569_v22 = vpop.eup %2568  ;;  %v1634_v25 = vsel %vm1365_vm0, %v2567_v20, 0.0 }
0x1981   :  { %v1635_v9 = vrot.slane %v1634_v25, 4  ;;  %v1627_v52 = vsel %vm1365_vm0, %v2569_v22, 0.0 }
0x1982   :  { %v1628_v54 = vrot.slane %v1627_v52, 4 }
0x1983   :  { %v1636_v12 = vadd.f32 %v1635_v9, %v1634_v25 }
0x1984   :  { %v1629_v5 = vadd.f32 %v1628_v54, %v1627_v52 }
0x1985   :  { %v1637_v14 = vrot.slane %v1636_v12, 2 }
0x1986   :  { %v1630_v26 = vrot.slane %v1629_v5, 2 }
0x1987   :  { %v1638_v31 = vadd.f32 %v1637_v14, %v1636_v12 }
0x1988   :  { %v1631_v27 = vadd.f32 %v1630_v26, %v1629_v5 }
0x1989   :  { %v1639_v4 = vrot.slane %v1638_v31, 1 }
0x198a   :  { %v1632_v28 = vrot.slane %v1631_v27, 1 }
0x198b   :  { %v1640_v29 = vadd.f32 %v1639_v4, %v1638_v31 }
0x198c   :  { %v1633_v34 = vadd.f32 %v1632_v28, %v1631_v27 }
0x198d   :  { %2570 = vlog2.f32 %v1640_v29 }
0x198e   :  { %2572 = vlog2.f32 %v1633_v34 }
0x1997   :  { %v2571_v36 = vpop.eup %2570 }
0x1998   :  { %v2573_v38 = vpop.eup %2572  ;;  %v1644_v39 = vmul.f32 0.6931472, %v2571_v36 }
0x1999   :  { %v1642_v40 = vmul.f32 0.6931472, %v2573_v38 }
0x199a   :  { %v1646_v46 = vadd.f32 %v1644_v39, %v1620_v13 }
0x199b   :  { %v1645_v51 = vadd.f32 %v1642_v40, %v1613_v15 }
0x199c   :  { %v1652_v37 = vadd.f32 %v1648_v41, %v1646_v46 }
0x199d   :  { %v1651_v60 = vadd.f32 %v1647_v17, %v1645_v51 }
0x199e   :  { %v1656_v45 = vrot.slane %v1652_v37, 1 }
0x199f   :  { %v1655_v61 = vrot.slane %v1651_v60, 2 }
0x19a1   :  { %v1658_v57 = vsel %vm1657_vm4, %v1656_v45, %v1655_v61  ;;  %v1766_v45 = vrot.slane %v3058_v47, 1 }
0x19a2   :  { %v3150_v23 = vsel %vm1418_vm2, %v1658_v57, %v1661_v21 }
0x19a3   :  { %v1718_v3 = vrot.slane %v3150_v23, %v1717_v62  ;;  %v1711_v63 = vrot.slane %v3150_v23, %v1710_v1 }
0x19a5   :  { %1720 = vbcast.lane.b32.xlu1 %v1718_v3, 256  ;;  %1713 = vbcast.lane.b32.xlu0 %v1711_v63, 256 }
0x19a9   :  { %1773 = vperm.xlu1 %2484, %v1771_v32   ;;  %v1783_v32 = vrot.slane %v3150_v23, 6 }
0x1a17   :  { %v1721_v44 = vpop.permute.xlu1 %1720  ;;  %v1714_v2 = vpop.permute.xlu0 %1713 }
0x1a18   :  { %v1723_v33 = vadd.f32 %v1721_v44, %v3083_v30  ;;  %v1722_v6 = vadd.f32 %v1714_v2, %v3083_v30 }
0x1a1a   :  { %v1731_v7 = vsel %vm1365_vm0, %v1723_v33, -inf  ;;  %v1724_v8 = vsel %vm1365_vm0, %v1722_v6, -inf }
0x1a1b   :  { %v1732_v56 = vrot.slane %v1731_v7, 4  ;;  %v1725_v10 = vrot.slane %v1724_v8, 4 }
0x1a1d   :  { %v1733_v11 = vmax.f32 %v1731_v7, %v1732_v56  ;;  %v1726_v13 = vmax.f32 %v1724_v8, %v1725_v10 }
0x1a1f   :  { %v1734_v15 = vrot.slane %v1733_v11, 2  ;;  %v1727_v18 = vrot.slane %v1726_v13, 2 }
0x1a21   :  { %v1735_v53 = vmax.f32 %v1733_v11, %v1734_v15  ;;  %v1728_v19 = vmax.f32 %v1726_v13, %v1727_v18 }
0x1a23   :  { %v1736_v42 = vrot.slane %v1735_v53, 1  ;;  %v1729_v35 = vrot.slane %v1728_v19, 1 }
0x1a25   :  { %v1737_v20 = vmax.f32 %v1735_v53, %v1736_v42  ;;  %v1730_v22 = vmax.f32 %v1728_v19, %v1729_v35 }
0x1a27   :  { %v1739_v25 = vsub.f32 %v1723_v33, %v1737_v20  ;;  %v1738_v9 = vsub.f32 %v1722_v6, %v1730_v22 }
0x1a28   :  { %v3169_v3 = vpop.permute.xlu1 %1773 }
0x1a29   :  { %v1742_v52 = vmul.f32 1.442695, %v1739_v25  ;;  %v1740_v54 = vmul.f32 1.442695, %v1738_v9  ;;  %vm1775_vm7 = vcmp.eq.s32.totalorder %v3169_v3, 1 }
0x1a2b   :  { %2574 = vpow2.f32 %v1742_v52 }
0x1a2c   :  { %2576 = vpow2.f32 %v1740_v54 }
0x1a35   :  { %v2575_v12 = vpop.eup %2574 }
0x1a36   :  { %v2577_v5 = vpop.eup %2576  ;;  %v1751_v14 = vsel %vm1365_vm0, %v2575_v12, 0.0 }
0x1a37   :  { %v1752_v26 = vrot.slane %v1751_v14, 4  ;;  %v1744_v31 = vsel %vm1365_vm0, %v2577_v5, 0.0 }
0x1a38   :  { %v1745_v27 = vrot.slane %v1744_v31, 4 }
0x1a39   :  { %v1753_v4 = vadd.f32 %v1752_v26, %v1751_v14 }
0x1a3a   :  { %v1746_v28 = vadd.f32 %v1745_v27, %v1744_v31 }
0x1a3b   :  { %v1754_v29 = vrot.slane %v1753_v4, 2 }
0x1a3c   :  { %v1747_v34 = vrot.slane %v1746_v28, 2 }
0x1a3d   :  { %v1755_v36 = vadd.f32 %v1754_v29, %v1753_v4 }
0x1a3e   :  { %v1748_v38 = vadd.f32 %v1747_v34, %v1746_v28 }
0x1a3f   :  { %v1756_v39 = vrot.slane %v1755_v36, 1 }
0x1a40   :  { %v1749_v40 = vrot.slane %v1748_v38, 1 }
0x1a41   :  { %v1757_v41 = vadd.f32 %v1756_v39, %v1755_v36 }
0x1a42   :  { %v1750_v46 = vadd.f32 %v1749_v40, %v1748_v38 }
0x1a43   :  { %2578 = vlog2.f32 %v1757_v41 }
0x1a44   :  { %2580 = vlog2.f32 %v1750_v46 }
0x1a4d   :  { %v2579_v17 = vpop.eup %2578 }
0x1a4e   :  { %v2581_v51 = vpop.eup %2580  ;;  %v1761_v37 = vmul.f32 0.6931472, %v2579_v17 }
0x1a4f   :  { %v1759_v60 = vmul.f32 0.6931472, %v2581_v51 }
0x1a50   :  { %v1763_v61 = vadd.f32 %v1761_v37, %v1737_v20 }
0x1a51   :  { %v1762_v21 = vadd.f32 %v1759_v60, %v1730_v22 }
0x1a52   :  { %v1770_v57 = vadd.f32 %v1766_v45, %v1763_v61 }
0x1a53   :  { %v1769_v0 = vadd.f32 %v1762_v21, %v3058_v47 }
0x1a54   :  { %v1778_v63 = vrot.slane %v1770_v57, 7  ;;  %v1883_v57 = vrot.slane %v3058_v47, 3 }
0x1a56   :  { %v1780_v44 = vsel %vm1779_vm6, %v1778_v63, %v1769_v0  ;;  %v1882_v0 = vrot.slane %v3058_v47, 2 }
0x1a57   :  { %v3177_v2 = vsel %vm1775_vm7, %v1780_v44, %v1783_v32 }
0x1a58   :  { %v1836_v33 = vrot.slane %v3177_v2, %v3066_v50  ;;  %v1829_v6 = vrot.slane %v3177_v2, %v3069_v16 }
0x1a5a   :  { %1838 = vbcast.lane.b32.xlu1 %v1836_v33, 256  ;;  %1831 = vbcast.lane.b32.xlu0 %v1829_v6, 256 }
0x1acc   :  { %v1839_v7 = vpop.permute.xlu1 %1838  ;;  %v1832_v8 = vpop.permute.xlu0 %1831 }
0x1acd   :  { %v1841_v23 = vadd.f32 %v1839_v7, %v3083_v30  ;;  %v1840_v56 = vadd.f32 %v1832_v8, %v3083_v30  ;;  %v1895_v8 = vrot.slane %v3177_v2, 6 }
0x1acf   :  { %v1849_v10 = vsel %vm1365_vm0, %v1841_v23, -inf  ;;  %v1842_v11 = vsel %vm1365_vm0, %v1840_v56, -inf }
0x1ad0   :  { %v1850_v13 = vrot.slane %v1849_v10, 4  ;;  %v1843_v15 = vrot.slane %v1842_v11, 4 }
0x1ad2   :  { %v1851_v18 = vmax.f32 %v1849_v10, %v1850_v13  ;;  %v1844_v53 = vmax.f32 %v1842_v11, %v1843_v15 }
0x1ad4   :  { %v1852_v19 = vrot.slane %v1851_v18, 2  ;;  %v1845_v42 = vrot.slane %v1844_v53, 2 }
0x1ad6   :  { %v1853_v35 = vmax.f32 %v1851_v18, %v1852_v19  ;;  %v1846_v20 = vmax.f32 %v1844_v53, %v1845_v42 }
0x1ad8   :  { %v1854_v22 = vrot.slane %v1853_v35, 1  ;;  %v1847_v25 = vrot.slane %v1846_v20, 1 }
0x1ada   :  { %v1855_v9 = vmax.f32 %v1853_v35, %v1854_v22  ;;  %v1848_v52 = vmax.f32 %v1846_v20, %v1847_v25 }
0x1adc   :  { %v1857_v54 = vsub.f32 %v1841_v23, %v1855_v9  ;;  %v1856_v12 = vsub.f32 %v1840_v56, %v1848_v52 }
0x1ade   :  { %v1860_v5 = vmul.f32 1.442695, %v1857_v54  ;;  %v1858_v14 = vmul.f32 1.442695, %v1856_v12 }
0x1ae0   :  { %2582 = vpow2.f32 %v1860_v5 }
0x1ae1   :  { %2584 = vpow2.f32 %v1858_v14 }
0x1aea   :  { %v2583_v26 = vpop.eup %2582 }
0x1aeb   :  { %v2585_v31 = vpop.eup %2584  ;;  %v1869_v27 = vsel %vm1365_vm0, %v2583_v26, 0.0 }
0x1aec   :  { %v1870_v4 = vrot.slane %v1869_v27, 4  ;;  %v1862_v28 = vsel %vm1365_vm0, %v2585_v31, 0.0 }
0x1aed   :  { %v1863_v29 = vrot.slane %v1862_v28, 4 }
0x1aee   :  { %v1871_v34 = vadd.f32 %v1870_v4, %v1869_v27 }
0x1aef   :  { %v1864_v36 = vadd.f32 %v1863_v29, %v1862_v28 }
0x1af0   :  { %v1872_v38 = vrot.slane %v1871_v34, 2 }
0x1af1   :  { %v1865_v39 = vrot.slane %v1864_v36, 2 }
0x1af2   :  { %v1873_v40 = vadd.f32 %v1872_v38, %v1871_v34 }
0x1af3   :  { %v1866_v41 = vadd.f32 %v1865_v39, %v1864_v36 }
0x1af4   :  { %v1874_v46 = vrot.slane %v1873_v40, 1 }
0x1af5   :  { %v1867_v17 = vrot.slane %v1866_v41, 1 }
0x1af6   :  { %v1875_v51 = vadd.f32 %v1874_v46, %v1873_v40 }
0x1af7   :  { %v1868_v37 = vadd.f32 %v1867_v17, %v1866_v41 }
0x1af8   :  { %2586 = vlog2.f32 %v1875_v51 }
0x1af9   :  { %2588 = vlog2.f32 %v1868_v37 }
0x1b02   :  { %v2587_v60 = vpop.eup %2586 }
0x1b03   :  { %v2589_v45 = vpop.eup %2588  ;;  %v1879_v61 = vmul.f32 0.6931472, %v2587_v60 }
0x1b04   :  { %v1877_v21 = vmul.f32 0.6931472, %v2589_v45 }
0x1b05   :  { %v1881_v63 = vadd.f32 %v1879_v61, %v1855_v9 }
0x1b06   :  { %v1880_v32 = vadd.f32 %v1877_v21, %v1848_v52 }
0x1b07   :  { %v1887_v44 = vadd.f32 %v1883_v57, %v1881_v63 }
0x1b08   :  { %v1886_v33 = vadd.f32 %v1882_v0, %v1880_v32 }
0x1b09   :  { %v1891_v6 = vrot.slane %v1887_v44, 5 }
0x1b0a   :  { %v1890_v7 = vrot.slane %v1886_v33, 6  ;;  %v1998_v33 = vrot.slane %v3058_v47, 5 }
0x1b0c   :  { %v1892_v23 = vsel %vm1423_vm1, %v1891_v6, %v1890_v7  ;;  %v1997_v7 = vrot.slane %v3058_v47, 4 }
0x1b0d   :  { %v3195_v56 = vsel %vm1775_vm7, %v1892_v23, %v1895_v8 }
0x1b0e   :  { %v1951_v10 = vrot.slane %v3195_v56, %v3096_v48  ;;  %v1944_v11 = vrot.slane %v3195_v56, %v3099_v24 }
0x1b10   :  { %1953 = vbcast.lane.b32.xlu1 %v1951_v10, 256  ;;  %1946 = vbcast.lane.b32.xlu0 %v1944_v11, 256 }
0x1b82   :  { %v1954_v13 = vpop.permute.xlu1 %1953  ;;  %v1947_v15 = vpop.permute.xlu0 %1946 }
0x1b83   :  { %v1956_v18 = vadd.f32 %v1954_v13, %v3083_v30  ;;  %v1955_v2 = vadd.f32 %v1947_v15, %v3083_v30  ;;  %v2010_v15 = vrot.slane %v3195_v56, 6 }
0x1b85   :  { %v1964_v53 = vsel %vm1365_vm0, %v1956_v18, -inf  ;;  %v1957_v19 = vsel %vm1365_vm0, %v1955_v2, -inf }
0x1b86   :  { %v1965_v42 = vrot.slane %v1964_v53, 4  ;;  %v1958_v35 = vrot.slane %v1957_v19, 4 }
0x1b88   :  { %v1966_v20 = vmax.f32 %v1964_v53, %v1965_v42  ;;  %v1959_v22 = vmax.f32 %v1957_v19, %v1958_v35  ;;  %v3222_v42 = vld [vmem:[%s3379_s9] sm:$0xff] }
0x1b89   :  { %v1433_v56 = vrot.slane %v3222_v42, %v3069_v16  ;;  %v1440_v35 = vrot.slane %v3222_v42, %v3066_v50 }
0x1b8a   :  { %v1967_v25 = vrot.slane %v1966_v20, 2  ;;  %v1960_v9 = vrot.slane %v1959_v22, 2 }
0x1b8c   :  { %v1968_v52 = vmax.f32 %v1966_v20, %v1967_v25  ;;  %v1961_v54 = vmax.f32 %v1959_v22, %v1960_v9  ;;  %v1344_v20 = vmul.f32 %v3072_v55, %v3222_v42  ;;  %v1550_v25 = vrot.slane %v3222_v42, %v3099_v24 }
0x1b8d   :  { %v1667_v9 = vrot.slane %v3222_v42, %v3124_v59  ;;  %v1796_v55 = vrot.slane %v3222_v42, %v1717_v62 }
0x1b8e   :  { %v1969_v12 = vrot.slane %v1968_v52, 1  ;;  %v1962_v5 = vrot.slane %v1961_v54, 1  ;;  %v1346_v22 = vsel %vm1345_vm8, %v1344_v20, 0.0 }
0x1b90   :  { %v1970_v14 = vmax.f32 %v1968_v52, %v1969_v12  ;;  %v1963_v26 = vmax.f32 %v1961_v54, %v1962_v5  ;;  %v1674_v52 = vrot.slane %v3222_v42, %v3121_v58  ;;  %v3243_v54 = vld [vmem:[%s3379_s9 + $0x8] sm:$0xff] }
0x1b91   :  { %v1908_v12 = vrot.slane %v3243_v54, %v3066_v50  ;;  %v2023_v5 = vrot.slane %v3243_v54, %v3096_v48 }
0x1b92   :  { %v1972_v31 = vsub.f32 %v1956_v18, %v1970_v14  ;;  %v1971_v27 = vsub.f32 %v1955_v2, %v1963_v26 }
0x1b94   :  { %v1975_v4 = vmul.f32 1.442695, %v1972_v31  ;;  %v1973_v28 = vmul.f32 1.442695, %v1971_v27 }
0x1b96   :  { %2590 = vpow2.f32 %v1975_v4 }
0x1b97   :  { %2592 = vpow2.f32 %v1973_v28 }
0x1ba0   :  { %v2591_v29 = vpop.eup %2590 }
0x1ba1   :  { %v2593_v34 = vpop.eup %2592  ;;  %v1984_v36 = vsel %vm1365_vm0, %v2591_v29, 0.0 }
0x1ba2   :  { %v1985_v38 = vrot.slane %v1984_v36, 4  ;;  %v1977_v39 = vsel %vm1365_vm0, %v2593_v34, 0.0 }
0x1ba3   :  { %v1978_v40 = vrot.slane %v1977_v39, 4 }
0x1ba4   :  { %v1986_v41 = vadd.f32 %v1985_v38, %v1984_v36 }
0x1ba5   :  { %v1979_v46 = vadd.f32 %v1978_v40, %v1977_v39 }
0x1ba6   :  { %v1987_v17 = vrot.slane %v1986_v41, 2 }
0x1ba7   :  { %v1980_v51 = vrot.slane %v1979_v46, 2 }
0x1ba8   :  { %v1988_v37 = vadd.f32 %v1987_v17, %v1986_v41 }
0x1ba9   :  { %v1981_v60 = vadd.f32 %v1980_v51, %v1979_v46 }
0x1baa   :  { %v1989_v45 = vrot.slane %v1988_v37, 1 }
0x1bab   :  { %v1982_v61 = vrot.slane %v1981_v60, 1 }
0x1bac   :  { %v1990_v21 = vadd.f32 %v1989_v45, %v1988_v37 }
0x1bad   :  { %v1983_v57 = vadd.f32 %v1982_v61, %v1981_v60 }
0x1bae   :  { %2594 = vlog2.f32 %v1990_v21 }
0x1baf   :  { %2596 = vlog2.f32 %v1983_v57 }
0x1bb8   :  { %v2595_v63 = vpop.eup %2594 }
0x1bb9   :  { %v2597_v0 = vpop.eup %2596  ;;  %v1994_v32 = vmul.f32 0.6931472, %v2595_v63 }
0x1bba   :  { %v1992_v44 = vmul.f32 0.6931472, %v2597_v0 }
0x1bbb   :  { %v1996_v6 = vadd.f32 %v1994_v32, %v1970_v14 }
0x1bbc   :  { %v1995_v8 = vadd.f32 %v1992_v44, %v1963_v26 }
0x1bbd   :  { %v2002_v23 = vadd.f32 %v1998_v33, %v1996_v6 }
0x1bbe   :  { %v2001_v10 = vadd.f32 %v1997_v7, %v1995_v8 }
0x1bbf   :  { %v2006_v11 = vrot.slane %v2002_v23, 3 }
0x1bc0   :  { %v2005_v13 = vrot.slane %v2001_v10, 4 }
0x1bc2   :  { %v2007_v18 = vsel %vm1540_vm3, %v2006_v11, %v2005_v13 }
0x1bc3   :  { %v3213_v2 = vsel %vm1775_vm7, %v2007_v18, %v2010_v15 }
0x1bc4   :  { %v2066_v53 = vrot.slane %v3213_v2, %v3121_v58  ;;  %v2059_v19 = vrot.slane %v3213_v2, %v3124_v59 }
0x1bc6   :  { %2068 = vbcast.lane.b32.xlu1 %v2066_v53, 256  ;;  %2061 = vbcast.lane.b32.xlu0 %v2059_v19, 256 }
0x1bca   :  { %1435 = vbcast.lane.b32.xlu1 %v1433_v56, 256 }
0x1bce   :  { %1442 = vbcast.lane.b32.xlu1 %v1440_v35, 256 }
0x1be5   :  { %1347 = vadd.xlane.f32.xlu0 %v1346_v22 }
0x1bfb   :  { %1552 = vbcast.lane.b32.xlu0 %v1550_v25, 256 }
0x1bff   :  { %1669 = vbcast.lane.b32.xlu0 %v1667_v9, 256 }
0x1c03   :  { %1676 = vbcast.lane.b32.xlu0 %v1674_v52, 256 }
0x1c07   :  { %1798 = vbcast.lane.b32.xlu0 %v1796_v55, 256 }
0x1c0b   :  { %1910 = vbcast.lane.b32.xlu0 %v1908_v12, 256 }
0x1c0f   :  { %2025 = vbcast.lane.b32.xlu0 %v2023_v5, 256 }
0x1c38   :  { %v2069_v14 = vpop.permute.xlu1 %2068  ;;  %v2062_v26 = vpop.permute.xlu0 %2061 }
0x1c39   :  { %v2071_v31 = vadd.f32 %v2069_v14, %v3083_v30  ;;  %v2070_v62 = vadd.f32 %v2062_v26, %v3083_v30 }
0x1c3b   :  { %v2079_v27 = vsel %vm1365_vm0, %v2071_v31, -inf  ;;  %v2072_v4 = vsel %vm1365_vm0, %v2070_v62, -inf }
0x1c3c   :  { %v2080_v28 = vrot.slane %v2079_v27, 4  ;;  %v2073_v29 = vrot.slane %v2072_v4, 4  ;;  %v1436_v34 = vpop.permute.xlu1 %1435 }
0x1c3d   :  { %v1444_v50 = vmul.f32 %v1436_v34, %v3083_v30 }
0x1c3e   :  { %v2081_v36 = vmax.f32 %v2079_v27, %v2080_v28  ;;  %v2074_v38 = vmax.f32 %v2072_v4, %v2073_v29 }
0x1c3f   :  { %v1446_v39 = vsel %vm1365_vm0, %v1444_v50, 0.0 }
0x1c40   :  { %v2082_v40 = vrot.slane %v2081_v36, 2  ;;  %v2075_v41 = vrot.slane %v2074_v38, 2  ;;  %v1447_v46 = vrot.slane %v1446_v39, 4  ;;  %v1443_v17 = vpop.permute.xlu1 %1442 }
0x1c41   :  { %v1445_v51 = vmul.f32 %v1443_v17, %v3083_v30  ;;  %v2016_v17 = vrot.slane %v3243_v54, %v3099_v24  ;;  %v3282_v24 = vld [vmem:[%s3378_s8] ss:$0 sm:$0xff] }
0x1c42   :  { %v2083_v37 = vmax.f32 %v2081_v36, %v2082_v40  ;;  %v2076_v60 = vmax.f32 %v2074_v38, %v2075_v41  ;;  %v1448_v45 = vadd.f32 %v1447_v46, %v1446_v39  ;;  %v1557_v36 = vrot.slane %v3222_v42, %v3096_v48 }
0x1c43   :  { %v1453_v61 = vsel %vm1365_vm0, %v1445_v51, 0.0  ;;  %v1789_v38 = vrot.slane %v3222_v42, %v1710_v1  ;;  %v1901_v39 = vrot.slane %v3243_v54, %v3069_v16  ;;  %v2113_v48 = vrot.slane %v3058_v47, 7 }
0x1c44   :  { %v2084_v21 = vrot.slane %v2083_v37, 1  ;;  %v2077_v57 = vrot.slane %v2076_v60, 1  ;;  %v1449_v63 = vrot.slane %v1448_v45, 2  ;;  %v1454_v0 = vrot.slane %v1453_v61, 4 }
0x1c45   :  { %v2131_v16 = vrot.slane %v3243_v54, %v3124_v59 }
0x1c46   :  { %v2085_v32 = vmax.f32 %v2083_v37, %v2084_v21  ;;  %v2078_v44 = vmax.f32 %v2076_v60, %v2077_v57  ;;  %v1450_v33 = vadd.f32 %v1449_v63, %v1448_v45  ;;  %v1455_v6 = vadd.f32 %v1454_v0, %v1453_v61 }
0x1c47   :  { %v2112_v60 = vrot.slane %v3058_v47, 6  ;;  %v2125_v63 = vrot.slane %v3213_v2, 6 }
0x1c48   :  { %v2087_v7 = vsub.f32 %v2071_v31, %v2085_v32  ;;  %v2086_v8 = vsub.f32 %v2070_v62, %v2078_v44  ;;  %v1451_v23 = vrot.slane %v1450_v33, 1  ;;  %v1456_v10 = vrot.slane %v1455_v6, 2 }
0x1c4a   :  { %v2090_v11 = vmul.f32 1.442695, %v2087_v7  ;;  %v2088_v13 = vmul.f32 1.442695, %v2086_v8  ;;  %v1457_v15 = vadd.f32 %v1456_v10, %v1455_v6  ;;  %v1452_v18 = vadd.f32 %v1451_v23, %v1450_v33 }
0x1c4c   :  { %2598 = vpow2.f32 %v2090_v11  ;;  %v1458_v53 = vrot.slane %v1457_v15, 1 }
0x1c4d   :  { %2600 = vpow2.f32 %v2088_v13  ;;  %v2138_v13 = vrot.slane %v3243_v54, %v3121_v58 }
0x1c4e   :  { %v1459_v19 = vadd.f32 %v1458_v53, %v1457_v15 }
0x1c50   :  { %v1462_v56 = vsel %vm1423_vm1, %v1459_v19, %v1452_v18 }
0x1c51   :  { %v1464_v35 = vadd.f32 %v1462_v56, %v3063_v49 }
0x1c53   :  { %v1465_v20 = vmul.f32 %v1464_v35, %v3222_v42 }
0x1c55   :  { %v1467_v22 = vsel %vm1466_vm9, %v1465_v20, 0.0 }
0x1c56   :  { %v2599_v25 = vpop.eup %2598  ;;  %1468 = vadd.xlane.f32.xlu1 %v1467_v22 }
0x1c57   :  { %v2601_v9 = vpop.eup %2600  ;;  %v2099_v52 = vsel %vm1365_vm0, %v2599_v25, 0.0 }
0x1c58   :  { %v2100_v55 = vrot.slane %v2099_v52, 4  ;;  %v2092_v12 = vsel %vm1365_vm0, %v2601_v9, 0.0 }
0x1c59   :  { %v2093_v5 = vrot.slane %v2092_v12, 4 }
0x1c5a   :  { %v2101_v14 = vadd.f32 %v2100_v55, %v2099_v52 }
0x1c5b   :  { %v2094_v26 = vadd.f32 %v2093_v5, %v2092_v12  ;;  %v3305_v5 = vld [vmem:[%s3376_s6] sm:$0xff] }
0x1c5c   :  { %v2102_v31 = vrot.slane %v2101_v14, 2 }
0x1c5d   :  { %v2095_v62 = vrot.slane %v2094_v26, 2 }
0x1c5e   :  { %v2103_v27 = vadd.f32 %v2102_v31, %v2101_v14 }
0x1c5f   :  { %v2096_v4 = vadd.f32 %v2095_v62, %v2094_v26 }
0x1c60   :  { %v2104_v28 = vrot.slane %v2103_v27, 1 }
0x1c61   :  { %v2097_v29 = vrot.slane %v2096_v4, 1 }
0x1c62   :  { %v2105_v34 = vadd.f32 %v2104_v28, %v2103_v27 }
0x1c63   :  { %v2098_v50 = vadd.f32 %v2097_v29, %v2096_v4 }
0x1c64   :  { %2602 = vlog2.f32 %v2105_v34 }
0x1c65   :  { %2604 = vlog2.f32 %v2098_v50 }
0x1c67   :  { %1559 = vbcast.lane.b32.xlu1 %v1557_v36, 256 }
0x1c6b   :  { %1791 = vbcast.lane.b32.xlu1 %v1789_v38, 256 }
0x1c6e   :  { %v2603_v40 = vpop.eup %2602 }
0x1c6f   :  { %v2605_v41 = vpop.eup %2604  ;;  %v2109_v46 = vmul.f32 0.6931472, %v2603_v40  ;;  %1903 = vbcast.lane.b32.xlu1 %v1901_v39, 256 }
0x1c70   :  { %v2107_v51 = vmul.f32 0.6931472, %v2605_v41 }
0x1c71   :  { %v2111_v37 = vadd.f32 %v2109_v46, %v2085_v32 }
0x1c72   :  { %v2110_v43 = vadd.f32 %v2107_v51, %v2078_v44  ;;  %v3274_v45 = vpop.xlane.xlu0 %1347 }
0x1c73   :  { %v2117_v1 = vadd.f32 %v2113_v48, %v2111_v37  ;;  %2018 = vbcast.lane.b32.xlu1 %v2016_v17, 256 }
0x1c74   :  { %v2116_v61 = vadd.f32 %v2112_v60, %v2110_v43 }
0x1c75   :  { %v2121_v21 = vrot.slane %v2117_v1, 1 }
0x1c76   :  { %v2120_v57 = vrot.slane %v2116_v61, 2  ;;  %v1553_v0 = vpop.permute.xlu0 %1552 }
0x1c77   :  { %2133 = vbcast.lane.b32.xlu1 %v2131_v16, 256  ;;  %v1561_v14 = vmul.f32 %v3305_v5, %v1553_v0 }
0x1c78   :  { %v2122_v32 = vsel %vm1657_vm4, %v2121_v21, %v2120_v57 }
0x1c79   :  { %v2127_v44 = vsel %vm1775_vm7, %v2122_v32, %v2125_v63  ;;  %v1563_v26 = vsel %vm1365_vm0, %v1561_v14, 0.0 }
0x1c7a   :  { %v3288_v59 = vadd.f32 %v3282_v24, %v2127_v44  ;;  %v1670_v2 = vpop.permute.xlu0 %1669  ;;  %v1564_v27 = vrot.slane %v1563_v26, 4 }
0x1c7b   :  { %v1678_v7 = vmul.f32 %v1670_v2, %v3083_v30 }
0x1c7c   :  { %v2178_v33 = vsel %vm1700_vm10, %v3288_v59, -inf  ;;  %v1565_v50 = vadd.f32 %v1564_v27, %v1563_v26 }
0x1c7d   :  { %2179 = vmax.xlane.f32.xlu0 %v2178_v33  ;;  %v1680_v23 = vsel %vm1365_vm0, %v1678_v7, 0.0 }
0x1c7e   :  { %v1677_v6 = vpop.permute.xlu0 %1676  ;;  %v1681_v11 = vrot.slane %v1680_v23, 4  ;;  %v1566_v41 = vrot.slane %v1565_v50, 2 }
0x1c7f   :  { %v1679_v8 = vmul.f32 %v1677_v6, %v3083_v30 }
0x1c80   :  { %v1682_v15 = vadd.f32 %v1681_v11, %v1680_v23  ;;  %v1567_v1 = vadd.f32 %v1566_v41, %v1565_v50 }
0x1c81   :  { %v1687_v10 = vsel %vm1365_vm0, %v1679_v8, 0.0 }
0x1c82   :  { %v1688_v3 = vrot.slane %v1687_v10, 4  ;;  %v1683_v53 = vrot.slane %v1682_v15, 2  ;;  %v1799_v58 = vpop.permute.xlu0 %1798  ;;  %v1568_v2 = vrot.slane %v1567_v1, 1 }
0x1c83   :  { %v1801_v31 = vmul.f32 %v3305_v5, %v1799_v58 }
0x1c84   :  { %v1689_v18 = vadd.f32 %v1688_v3, %v1687_v10  ;;  %v1684_v56 = vadd.f32 %v1683_v53, %v1682_v15 }
0x1c85   :  { %v1809_v4 = vsel %vm1365_vm0, %v1801_v31, 0.0 }
0x1c86   :  { %v1690_v19 = vrot.slane %v1689_v18, 2  ;;  %v1685_v20 = vrot.slane %v1684_v56, 1  ;;  %v1911_v62 = vpop.permute.xlu0 %1910  ;;  %v1810_v36 = vrot.slane %v1809_v4, 4 }
0x1c87   :  { %v1913_v28 = vmul.f32 %v3305_v5, %v1911_v62 }
0x1c88   :  { %v1691_v35 = vadd.f32 %v1690_v19, %v1689_v18  ;;  %v1686_v25 = vadd.f32 %v1685_v20, %v1684_v56  ;;  %v1811_v46 = vadd.f32 %v1810_v36, %v1809_v4  ;;  %v1569_v19 = vadd.f32 %v1568_v2, %v1567_v1 }
0x1c89   :  { %v1921_v38 = vsel %vm1365_vm0, %v1913_v28, 0.0 }
0x1c8a   :  { %v1692_v22 = vrot.slane %v1691_v35, 1  ;;  %v2026_v29 = vpop.permute.xlu0 %2025  ;;  %v1922_v17 = vrot.slane %v1921_v38, 4  ;;  %v1812_v16 = vrot.slane %v1811_v46, 2 }
0x1c8b   :  { %v2028_v39 = vmul.f32 %v3305_v5, %v2026_v29 }
0x1c8c   :  { %v1693_v30 = vadd.f32 %v1692_v22, %v1691_v35  ;;  %v1923_v61 = vadd.f32 %v1922_v17, %v1921_v38  ;;  %v1813_v6 = vadd.f32 %v1812_v16, %v1811_v46 }
0x1c8d   :  { %v2036_v48 = vsel %vm1365_vm0, %v2028_v39, 0.0 }
0x1c8e   :  { %v1696_v9 = vsel %vm1657_vm4, %v1693_v30, %v1686_v25  ;;  %v2037_v57 = vrot.slane %v2036_v48, 4  ;;  %v1924_v7 = vrot.slane %v1923_v61, 2  ;;  %v1814_v56 = vrot.slane %v1813_v6, 1 }
0x1c8f   :  { %v1698_v52 = vadd.f32 %v1696_v9, %v3063_v49 }
0x1c90   :  { %v2038_v23 = vadd.f32 %v2037_v57, %v2036_v48  ;;  %v1925_v35 = vadd.f32 %v1924_v7, %v1923_v61  ;;  %v1815_v26 = vadd.f32 %v1814_v56, %v1813_v6 }
0x1c91   :  { %v1699_v55 = vmul.f32 %v1698_v52, %v3222_v42 }
0x1c92   :  { %v2039_v22 = vrot.slane %v2038_v23, 2  ;;  %v1926_v31 = vrot.slane %v1925_v35, 1 }
0x1c93   :  { %2140 = vbcast.lane.b32.xlu0 %v2138_v13, 256  ;;  %v1701_v12 = vsel %vm1700_vm10, %v1699_v55, 0.0 }
0x1c94   :  { %v2040_v27 = vadd.f32 %v2039_v22, %v2038_v23  ;;  %v1927_v46 = vadd.f32 %v1926_v31, %v1925_v35 }
0x1c96   :  { %v2041_v17 = vrot.slane %v2040_v27, 1 }
0x1c98   :  { %v2042_v16 = vadd.f32 %v2041_v17, %v2040_v27 }
0x1cb2   :  { %1702 = vadd.xlane.f32.xlu0 %v1701_v12 }
0x1ce3   :  { %v3312_v34 = vpop.xlane.xlu1 %1468 }
0x1ce4   :  { %v1471_v27 = vrot.slane %v3312_v34, 2 }
0x1ce7   :  { %v1560_v40 = vpop.permute.xlu1 %1559 }
0x1ce8   :  { %v1562_v51 = vmul.f32 %v3305_v5, %v1560_v40 }
0x1cea   :  { %v1570_v37 = vsel %vm1365_vm0, %v1562_v51, 0.0 }
0x1ceb   :  { %v1571_v60 = vrot.slane %v1570_v37, 4  ;;  %v1792_v43 = vpop.permute.xlu1 %1791 }
0x1cec   :  { %v1800_v21 = vmul.f32 %v3305_v5, %v1792_v43 }
0x1ced   :  { %v1572_v63 = vadd.f32 %v1571_v60, %v1570_v37 }
0x1cee   :  { %v1802_v0 = vsel %vm1365_vm0, %v1800_v21, 0.0 }
0x1cef   :  { %v1573_v32 = vrot.slane %v1572_v63, 2  ;;  %v1803_v44 = vrot.slane %v1802_v0, 4  ;;  %v1904_v33 = vpop.permute.xlu1 %1903 }
0x1cf0   :  { %v1912_v8 = vmul.f32 %v3305_v5, %v1904_v33 }
0x1cf1   :  { %v1574_v10 = vadd.f32 %v1573_v32, %v1572_v63  ;;  %v1804_v11 = vadd.f32 %v1803_v44, %v1802_v0 }
0x1cf2   :  { %v1914_v3 = vsel %vm1365_vm0, %v1912_v8, 0.0 }
0x1cf3   :  { %v1575_v13 = vrot.slane %v1574_v10, 1  ;;  %v1805_v15 = vrot.slane %v1804_v11, 2  ;;  %v1915_v18 = vrot.slane %v1914_v3, 4  ;;  %v2019_v53 = vpop.permute.xlu1 %2018 }
0x1cf4   :  { %v2027_v20 = vmul.f32 %v3305_v5, %v2019_v53 }
0x1cf5   :  { %v1576_v25 = vadd.f32 %v1575_v13, %v1574_v10  ;;  %v1806_v30 = vadd.f32 %v1805_v15, %v1804_v11  ;;  %v1916_v9 = vadd.f32 %v1915_v18, %v1914_v3 }
0x1cf6   :  { %v2029_v52 = vsel %vm1365_vm0, %v2027_v20, 0.0 }
0x1cf7   :  { %v1807_v55 = vrot.slane %v1806_v30, 1  ;;  %v1917_v12 = vrot.slane %v1916_v9, 2  ;;  %v2030_v58 = vrot.slane %v2029_v52, 4  ;;  %v1579_v14 = vsel %vm1540_vm3, %v1576_v25, %v1569_v19  ;;  %v2134_v37 = vpop.permute.xlu1 %2133 }
0x1cf8   :  { %v1581_v62 = vadd.f32 %v1579_v14, %v3063_v49  ;;  %v2142_v21 = vmul.f32 %v3305_v5, %v2134_v37 }
0x1cf9   :  { %v1808_v4 = vadd.f32 %v1807_v55, %v1806_v30  ;;  %v1918_v28 = vadd.f32 %v1917_v12, %v1916_v9  ;;  %v2031_v29 = vadd.f32 %v2030_v58, %v2029_v52 }
0x1cfa   :  { %v1582_v50 = vmul.f32 %v1581_v62, %v3222_v42  ;;  %v2144_v44 = vsel %vm1365_vm0, %v2142_v21, 0.0 }
0x1cfb   :  { %v1919_v36 = vrot.slane %v1918_v28, 1  ;;  %v2032_v38 = vrot.slane %v2031_v29, 2  ;;  %v1818_v39 = vsel %vm1779_vm6, %v1815_v26, %v1808_v4  ;;  %v2145_v2 = vrot.slane %v2144_v44, 4 }
0x1cfc   :  { %v1584_v40 = vsel %vm1583_vm11, %v1582_v50, 0.0  ;;  %v1820_v41 = vadd.f32 %v1818_v39, %v3058_v47 }
0x1cfd   :  { %v1920_v51 = vadd.f32 %v1919_v36, %v1918_v28  ;;  %v2033_v48 = vadd.f32 %v2032_v38, %v2031_v29  ;;  %1585 = vadd.xlane.f32.xlu1 %v1584_v40  ;;  %v2146_v23 = vadd.f32 %v2145_v2, %v2144_v44  ;;  %v1473_v29 = vadd.f32 %v1471_v27, %v3274_v45 }
0x1cfe   :  { %v1821_v49 = vmul.f32 %v1820_v41, %v3243_v54 }
0x1cff   :  { %v2034_v60 = vrot.slane %v2033_v48, 1  ;;  %v1930_v43 = vsel %vm1423_vm1, %v1927_v46, %v1920_v51  ;;  %v2147_v13 = vrot.slane %v2146_v23, 2 }
0x1d00   :  { %v1822_v42 = vsel %vm1345_vm8, %v1821_v49, 0.0  ;;  %v1932_v1 = vadd.f32 %v1930_v43, %v3058_v47 }
0x1d01   :  { %v2035_v61 = vadd.f32 %v2034_v60, %v2033_v48  ;;  %1823 = vadd.xlane.f32.xlu0 %v1822_v42  ;;  %v2148_v53 = vadd.f32 %v2147_v13, %v2146_v23 }
0x1d02   :  { %v1933_v57 = vmul.f32 %v1932_v1, %v3243_v54 }
0x1d03   :  { %v2045_v63 = vsel %vm1540_vm3, %v2042_v16, %v2035_v61  ;;  %v2149_v35 = vrot.slane %v2148_v53, 1 }
0x1d04   :  { %v1934_v0 = vsel %vm1466_vm9, %v1933_v57, 0.0  ;;  %v2047_v32 = vadd.f32 %v2045_v63, %v3058_v47 }
0x1d05   :  { %1935 = vadd.xlane.f32.xlu1 %v1934_v0 }
0x1d06   :  { %v2048_v33 = vmul.f32 %v2047_v32, %v3243_v54 }
0x1d08   :  { %v2049_v6 = vsel %vm1583_vm11, %v2048_v33, 0.0 }
0x1d09   :  { %2050 = vadd.xlane.f32.xlu0 %v2049_v6 }
0x1d0a   :  { %v2180_v7 = vpop.xlane.xlu0 %2179 }
0x1d0b   :  { %v2181_v8 = vsub.f32 %v3288_v59, %v2180_v7  ;;  %v2150_v59 = vadd.f32 %v2149_v35, %v2148_v53 }
0x1d0d   :  { %v2182_v10 = vmul.f32 1.442695, %v2181_v8 }
0x1d0e   :  { %v2141_v11 = vpop.permute.xlu0 %2140 }
0x1d0f   :  { %2606 = vpow2.f32 %v2182_v10  ;;  %v2143_v3 = vmul.f32 %v3305_v5, %v2141_v11  ;;  %v2190_v5 = vld [vmem:[%s3381_s11] sm:$0x3]  ;;  %s2643_s11 = smov [#allocation2]  }
0x1d10   :  { %v2191_v58 = vmul.f32 %v3282_v24, %v2190_v5  ;;  %s2219_s25 = sshll.u32 %s2643_s11, 4  ;;  %s2220_s25 = int_to_ptr.vmem [resolvable:$true] %s2219_s25 }
0x1d11   :  { %v2151_v15 = vsel %vm1365_vm0, %v2143_v3, 0.0  ;;  %s2612_s26 = scalar_lea.vmem %s2220_s25, 16  ;;  %s2616_s27 = scalar_lea.vmem %s2220_s25, 32 }
0x1d12   :  { %v2152_v18 = vrot.slane %v2151_v15, 4  ;;  %v2192_v26 = vsel %vm1345_vm8, %v2191_v58, 0.0  ;;  %p2613_p0 = scmp.ne.s32.totalorder %s2220_s25, %s2612_s26  ;;  %p2617_p1 = scmp.lt.s32.totalorder %s2220_s25, %s2220_s25 }
0x1d13   :  { %p2618_p2 = scmp.lt.s32.totalorder %s2616_s27, %s2612_s26 }
0x1d14   :  { %v2153_v19 = vadd.f32 %v2152_v18, %v2151_v15 }
0x1d15   :  { %p2619_p3 = por %p2618_p2, %p2617_p1 }
0x1d16   :  { %v2154_v56 = vrot.slane %v2153_v19, 2 }
0x1d17   :  { %p2620_p4 = pnand %p2619_p3, %p2613_p0 }
0x1d18   :  { %v2155_v20 = vadd.f32 %v2154_v56, %v2153_v19 }
0x1d19   :  { %v2607_v22 = vpop.eup %2606 }
0x1d1a   :  { %v2156_v25 = vrot.slane %v2155_v20, 1  ;;  %v2184_v30 = vsel %vm1700_vm10, %v2607_v22, 0.0 }
0x1d1b   :  { %2185 = vadd.xlane.f32.xlu0 %v2184_v30 }
0x1d1c   :  { %v2157_v9 = vadd.f32 %v2156_v25, %v2155_v20 }
0x1d1e   :  { %v2160_v52 = vsel %vm1657_vm4, %v2157_v9, %v2150_v59 }
0x1d1f   :  { %v2162_v55 = vadd.f32 %v2160_v52, %v3058_v47 }
0x1d21   :  { %v2163_v12 = vmul.f32 %v2162_v55, %v3243_v54 }
0x1d23   :  { %v2164_v14 = vsel %vm1700_vm10, %v2163_v12, 0.0 }
0x1d24   :  { %2165 = vadd.xlane.f32.xlu1 %v2164_v14 }
0x1d28   :  { %2193 = vadd.xlane.f32.xlu1 %v2192_v26 }
0x1d3f   :  { %v1703_v31 = vpop.xlane.xlu0 %1702 }
0x1d40   :  { %v1705_v36 = vrot.slane %v1703_v31, 6 }
0x1d8a   :  { %v1586_v62 = vpop.xlane.xlu1 %1585 }
0x1d8b   :  { %v1588_v28 = vrot.slane %v1586_v62, 4 }
0x1d8d   :  { %v1590_v47 = vadd.f32 %v1588_v28, %v1473_v29 }
0x1d8e   :  { %v1824_v4 = vpop.xlane.xlu0 %1823 }
0x1d8f   :  { %v1707_v24 = vadd.f32 %v1705_v36, %v1590_v47 }
0x1d91   :  { %v1825_v40 = vadd.f32 %v1824_v4, %v1707_v24 }
0x1d92   :  { %v1936_v38 = vpop.xlane.xlu1 %1935 }
0x1d93   :  { %v1938_v39 = vrot.slane %v1936_v38, 2 }
0x1d95   :  { %v1940_v46 = vadd.f32 %v1938_v39, %v1825_v40 }
0x1d96   :  { %v2051_v50 = vpop.xlane.xlu0 %2050 }
0x1d97   :  { %v2053_v41 = vrot.slane %v2051_v50, 4 }
0x1d99   :  { %v2055_v51 = vadd.f32 %v2053_v41, %v1940_v46 }
0x1da8   :  { %v2186_v54 = vpop.xlane.xlu0 %2185 }
0x1da9   :  { %2608 = vlog2.f32 %v2186_v54 }
0x1db1   :  { %v2166_v17 = vpop.xlane.xlu1 %2165 }
0x1db2   :  { %v2168_v48 = vrot.slane %v2166_v17, 6 }
0x1db3   :  { %v2609_v49 = vpop.eup %2608 }
0x1db4   :  { %v2188_v34 = vmul.f32 0.6931472, %v2609_v49  ;;  %v2170_v37 = vadd.f32 %v2168_v48, %v2055_v51 }
0x1db5   :  { %v2194_v60 = vpop.xlane.xlu1 %2193 }
0x1db6   :  { %v2195_v43 = vadd.f32 %v2194_v60, %v2170_v37  ;;  %v2189_v45 = vadd.f32 %v2188_v34, %v2180_v7 }
0x1db8   :  { %v2197_v42 = vrot.slane %v2195_v43, 2 }
0x1dba   :  { %v2199_v1 = vsub.f32 %v2189_v45, %v2197_v42 }
0x1dbc   :  { %v2201_v16 = vrot.slane %v2199_v1, 6 }
0x1dbe   :  { %v2204_v61 = vsel %vm2203_vm12, %v2201_v16, 0.0 }
0x1dbf   :  { %v2205_v21 = vrot.slane %v2204_v61, 4 }
0x1dc1   :  { %v2206_v57 = vadd.f32 %v2205_v21, %v2204_v61 }
0x1dc3   :  { %v2207_v63 = vrot.slane %v2206_v57, 2 }
0x1dc5   :  { %v2208_v0 = vadd.f32 %v2207_v63, %v2206_v57 }
0x1dc7   :  { %v2209_v32 = vrot.slane %v2208_v0, 1 }
0x1dc9   :  { %v2210_v44 = vadd.f32 %v2209_v32, %v2208_v0 }
0x1dcb   :  { %2212 = vst.msk [vmem:[#allocation2] sm:$0x1] %vm2211_vm13, %v2210_v44 }
0x1dcc   :  { %2623 = shalt.err (!%p2620_p4)
}
0x1dcd   :  { %s2624_s30 = scalar_lea.hbm %s3382_s12, 16 }
0x1dce   :  { %p2625_p5 = scmp.ne.s32.totalorder %s3382_s12, %s2624_s30  ;;  %p2628_p6 = scmp.lt.u32.totalorder %s2624_s30, %s3382_s12 }
0x1dd0   :  { %p2630_p7 = pnand %p2628_p6, %p2625_p5 }
0x1dd2   :  { %2633 = shalt.err (!%p2630_p7)
}
0x1dd3   :  { %2222 = dma.vmem_to_hbm [thread:$0]  %s2220_s25, 16, %s3382_s12, [#allocation3]  }
0x1dd4   :  { %2634 = dma.done.wait [#allocation3], 16  }
0x1dd5   :  { %2635 = vsyncadd [#allocation3], 4294967280 }
0x1dd6   :  { %2226 = vsyncpa [#allocation3], 1 }

</bundles_post_ra>
